<compile_context>
chip_gen: v7x
topology: tpu7x:2x2x1
jax: 0.10.0
libtpu: 0.0.40
codegen_flags: <defaults>
</compile_context>

<pallas_src>
import jax
import jax.numpy as jnp
from jax.experimental import pallas as pl
from jax.experimental.pallas import tpu as pltpu

# ---- model config (small, consistent with the module) ----
BATCH = 2
SEQ = 8           # seq_length
FEAT = 4          # feature_number
HID = 32          # hidden_dim
LAYERS = 2        # n_layers
OUT = 1           # output_size
FC1 = 8


def lstm_fc_kernel(
    x2d_ref,                      # (T*PB, F)  time-major input, batch padded to PB
    h0_ref, c0_ref,               # (L, B, H)  initial hidden / cell state
    wih0_ref, whh0_ref, b0_ref,   # layer 0: (F,4H), (H,4H), (1,4H)  [g cols x2]
    wih1_ref, whh1_ref, b1_ref,   # layer 1: (H,4H), (H,4H), (1,4H)  [g cols x2]
    wfc1_ref, bfc1_ref,           # (T*H, FC1), (1, FC1)
    wfc2_ref, bfc2_ref,           # (FC1, O),   (1, O)
    out_ref,                      # (B, O)
    hN_ref, cN_ref,               # (L, B, H)
):
    L, B, H = h0_ref.shape
    PB = ((B + 7) // 8) * 8            # batch rows padded to a sublane group
    T = x2d_ref.shape[0] // PB
    NFC1 = bfc1_ref.shape[-1]

    # ---- hoist all weight / bias loads out of the time loop ----
    wih0 = wih0_ref[...]
    whh0 = whh0_ref[...]
    b0 = b0_ref[...]
    wih1 = wih1_ref[...]
    whh1 = whh1_ref[...]
    b1 = b1_ref[...]
    bfc1 = bfc1_ref[...]
    wfc2 = wfc2_ref[...]
    bfc2 = bfc2_ref[...]

    # ---- layer-0 input projection for ALL timesteps in one matmul ----
    # (no recurrent dependency -> off the serial critical path)
    xg = jnp.dot(x2d_ref[...], wih0, preferred_element_type=jnp.float32) + b0   # (T*PB, 4H)

    # ---- register-carried recurrent state ----
    h0 = h0_ref[0]
    c0 = c0_ref[0]
    h1 = h0_ref[1]
    c1 = c0_ref[1]
    acc = jnp.zeros((B, NFC1), jnp.float32) + bfc1       # fc1 accumulator (registers)

    def cell(gates, c_prev):
        # One sigmoid over the full (B, 4H) tile; g columns were pre-scaled x2
        # in the wrapper so tanh(g_orig) == 2*sigmoid(2*g_orig) - 1 holds.
        s = jax.nn.sigmoid(gates)
        i = s[:, 0 * H:1 * H]
        f = s[:, 1 * H:2 * H]
        g = 2.0 * s[:, 2 * H:3 * H] - 1.0                # == tanh(g_orig)
        o = s[:, 3 * H:4 * H]
        c_new = f * c_prev + i * g
        h_new = o * (2.0 * jax.nn.sigmoid(2.0 * c_new) - 1.0)   # == o * tanh(c_new)
        return h_new, c_new

    # Fully unrolled time loop (T is static): the scheduler can overlap
    # layer 0 at step t+1 with layer 1 at step t (wavefront pipelining).
    for t in range(T):
        # ----- LSTM layer 0 -----
        g0 = xg[t * PB:t * PB + B, :] + jnp.dot(
            h0, whh0, preferred_element_type=jnp.float32)
        h0, c0 = cell(g0, c0)

        # ----- LSTM layer 1 (inter-layer dropout = identity in eval) -----
        g1 = (jnp.dot(h0, wih1, preferred_element_type=jnp.float32)
              + jnp.dot(h1, whh1, preferred_element_type=jnp.float32)
              + b1)
        h1, c1 = cell(g1, c1)

        # Incremental flatten @ fc1 (== view(B,-1) @ Wfc1): register
        # accumulator + static weight slice, off the recurrent chain.
        acc = acc + jnp.dot(h1, wfc1_ref[t * H:(t + 1) * H, :],
                            preferred_element_type=jnp.float32)

    # ---- write outputs exactly once ----
    hN_ref[0] = h0
    hN_ref[1] = h1
    cN_ref[0] = c0
    cN_ref[1] = c1

    fc1 = jnp.maximum(acc, 0.0)                           # relu (dropout = identity)
    out_ref[...] = jax.nn.sigmoid(
        jnp.dot(fc1, wfc2, preferred_element_type=jnp.float32) + bfc2)


def _scale_g_gate(w, H):
    """Multiply the g-gate columns [2H, 3H) by 2 (for tanh(x) = 2*sigmoid(2x)-1)."""
    scale = jnp.concatenate([
        jnp.ones((2 * H,), w.dtype),
        jnp.full((H,), 2.0, w.dtype),
        jnp.ones((H,), w.dtype),
    ])
    return w * scale[None, :]


@jax.jit
def lstm_forward(x, h0, c0, params):
    """x: (B, T, F); h0, c0: (L, B, H). Returns (out, (h_n, c_n))."""
    B, T, F = x.shape
    L, _, H = h0.shape
    O = params["wfc2"].shape[1]
    PB = ((B + 7) // 8) * 8

    # Time-major + pad batch to a full sublane group so the per-step slices of
    # the precomputed input projection are vreg-aligned inside the kernel.
    x_tm = jnp.transpose(x, (1, 0, 2))                    # (T, B, F)
    x_pad = jnp.pad(x_tm, ((0, 0), (0, PB - B), (0, 0)))  # (T, PB, F)
    x2d = x_pad.reshape(T * PB, F)

    args = (
        x2d, h0, c0,
        _scale_g_gate(params["wih0"], H), _scale_g_gate(params["whh0"], H),
        _scale_g_gate(params["b0"], H),
        _scale_g_gate(params["wih1"], H), _scale_g_gate(params["whh1"], H),
        _scale_g_gate(params["b1"], H),
        params["wfc1"], params["bfc1"],
        params["wfc2"], params["bfc2"],
    )
    vmem = pl.BlockSpec(memory_space=pltpu.MemorySpace.VMEM)

    # NOTE(v7x): single-core call, no grid (total footprint ~60 KB << VMEM).
    # For many independent sequences, add a leading batch grid axis marked
    # "parallel" to use both TensorCores.
    out, h_n, c_n = pl.pallas_call(
        lstm_fc_kernel,
        out_shape=(
            jax.ShapeDtypeStruct((B, O), jnp.float32),
            jax.ShapeDtypeStruct((L, B, H), jnp.float32),
            jax.ShapeDtypeStruct((L, B, H), jnp.float32),
        ),
        in_specs=[vmem] * len(args),
        out_specs=(vmem, vmem, vmem),
    )(*args)
    return out, (h_n, c_n)


# ---------------- pure-JAX reference (uses UNscaled params) ----------------
def reference_forward(x, h0, c0, params):
    B, T, F = x.shape
    H = HID

    def cell(x_t, h, c, wih, whh, b):
        g = x_t @ wih + h @ whh + b
        i = jax.nn.sigmoid(g[:, :H])
        f = jax.nn.sigmoid(g[:, H:2 * H])
        gg = jnp.tanh(g[:, 2 * H:3 * H])
        o = jax.nn.sigmoid(g[:, 3 * H:])
        c_n = f * c + i * gg
        return o * jnp.tanh(c_n), c_n

    h = [h0[l] for l in range(LAYERS)]
    c = [c0[l] for l in range(LAYERS)]
    outs = []
    for t in range(T):
        inp = x[:, t, :]
        h[0], c[0] = cell(inp, h[0], c[0], params["wih0"], params["whh0"], params["b0"])
        h[1], c[1] = cell(h[0], h[1], c[1], params["wih1"], params["whh1"], params["b1"])
        outs.append(h[1])
    flat = jnp.stack(outs, axis=1).reshape(B, T * H)
    fc1 = jnp.maximum(flat @ params["wfc1"] + params["bfc1"], 0.0)
    out = jax.nn.sigmoid(fc1 @ params["wfc2"] + params["bfc2"])
    return out, (jnp.stack(h), jnp.stack(c))


def init_params(key):
    k = 1.0 / jnp.sqrt(HID)
    keys = jax.random.split(key, 12)

    def u(kk, shape, scale):
        return jax.random.uniform(kk, shape, jnp.float32, -scale, scale)

    return {
        # LSTM layer 0 (input size = FEAT)
        "wih0": u(keys[0], (FEAT, 4 * HID), k),
        "whh0": u(keys[1], (HID, 4 * HID), k),
        "b0":   u(keys[2], (1, 4 * HID), k),    # b_ih + b_hh combined
        # LSTM layer 1 (input size = HID)
        "wih1": u(keys[3], (HID, 4 * HID), k),
        "whh1": u(keys[4], (HID, 4 * HID), k),
        "b1":   u(keys[5], (1, 4 * HID), k),
        # fc1: Linear(HID*SEQ -> 8)
        "wfc1": u(keys[6], (HID * SEQ, FC1), 1.0 / jnp.sqrt(HID * SEQ)),
        "bfc1": u(keys[7], (1, FC1), 1.0 / jnp.sqrt(HID * SEQ)),
        # fc2: Linear(8 -> OUT)
        "wfc2": u(keys[8], (FC1, OUT), 1.0 / jnp.sqrt(FC1)),
        "bfc2": u(keys[9], (1, OUT), 1.0 / jnp.sqrt(FC1)),
    }


if __name__ == "__main__":
    key = jax.random.PRNGKey(0)
    kx, kp = jax.random.split(key)

    x = jax.random.normal(kx, (BATCH, SEQ, FEAT), jnp.float32)
    h0 = jnp.zeros((LAYERS, BATCH, HID), jnp.float32)   # init_hidden
    c0 = jnp.zeros((LAYERS, BATCH, HID), jnp.float32)
    params = init_params(kp)

    out, (h_n, c_n) = lstm_forward(x, h0, c0, params)
    jax.block_until_ready((out, h_n, c_n))

    ref_out, (ref_h, ref_c) = reference_forward(x, h0, c0, params)
    assert out.shape == (BATCH, OUT)
    assert h_n.shape == (LAYERS, BATCH, HID) and c_n.shape == (LAYERS, BATCH, HID)
    assert jnp.allclose(out, ref_out, atol=1e-3, rtol=1e-3)
    assert jnp.allclose(h_n, ref_h, atol=1e-3, rtol=1e-3)
    assert jnp.allclose(c_n, ref_c, atol=1e-3, rtol=1e-3)

    print("KERNEL_OK")
</pallas_src>

<mosaic_0001>
module attributes {stable_mosaic.version = 11 : i64} {
  func.func @lstm_fc_kernel(%arg0: memref<64x4xf32, #tpu.memory_space<vmem>>, %arg1: memref<2x2x32xf32, #tpu.memory_space<vmem>>, %arg2: memref<2x2x32xf32, #tpu.memory_space<vmem>>, %arg3: memref<4x128xf32, #tpu.memory_space<vmem>>, %arg4: memref<32x128xf32, #tpu.memory_space<vmem>>, %arg5: memref<1x128xf32, #tpu.memory_space<vmem>>, %arg6: memref<32x128xf32, #tpu.memory_space<vmem>>, %arg7: memref<32x128xf32, #tpu.memory_space<vmem>>, %arg8: memref<1x128xf32, #tpu.memory_space<vmem>>, %arg9: memref<256x8xf32, #tpu.memory_space<vmem>>, %arg10: memref<1x8xf32, #tpu.memory_space<vmem>>, %arg11: memref<8x1xf32, #tpu.memory_space<vmem>>, %arg12: memref<1x1xf32, #tpu.memory_space<vmem>>, %arg13: memref<2x1xf32, #tpu.memory_space<vmem>>, %arg14: memref<2x2x32xf32, #tpu.memory_space<vmem>>, %arg15: memref<2x2x32xf32, #tpu.memory_space<vmem>>) attributes {dimension_semantics = [], scalar_prefetch = 0 : i64, scratch_operands = 0 : i64, tpu.core_type = #tpu.core_type<tc>} {
    %c0 = arith.constant 0 : index
    %c0_0 = arith.constant 0 : index
    %0 = vector.load %arg3[%c0, %c0_0] : memref<4x128xf32, #tpu.memory_space<vmem>>, vector<4x128xf32>
    %c0_1 = arith.constant 0 : index
    %c0_2 = arith.constant 0 : index
    %1 = vector.load %arg4[%c0_1, %c0_2] : memref<32x128xf32, #tpu.memory_space<vmem>>, vector<32x128xf32>
    %c0_3 = arith.constant 0 : index
    %c0_4 = arith.constant 0 : index
    %2 = vector.load %arg5[%c0_3, %c0_4] : memref<1x128xf32, #tpu.memory_space<vmem>>, vector<1x128xf32>
    %c0_5 = arith.constant 0 : index
    %c0_6 = arith.constant 0 : index
    %3 = vector.load %arg6[%c0_5, %c0_6] : memref<32x128xf32, #tpu.memory_space<vmem>>, vector<32x128xf32>
    %c0_7 = arith.constant 0 : index
    %c0_8 = arith.constant 0 : index
    %4 = vector.load %arg7[%c0_7, %c0_8] : memref<32x128xf32, #tpu.memory_space<vmem>>, vector<32x128xf32>
    %c0_9 = arith.constant 0 : index
    %c0_10 = arith.constant 0 : index
    %5 = vector.load %arg8[%c0_9, %c0_10] : memref<1x128xf32, #tpu.memory_space<vmem>>, vector<1x128xf32>
    %c0_11 = arith.constant 0 : index
    %c0_12 = arith.constant 0 : index
    %6 = vector.load %arg10[%c0_11, %c0_12] : memref<1x8xf32, #tpu.memory_space<vmem>>, vector<1x8xf32>
    %c0_13 = arith.constant 0 : index
    %c0_14 = arith.constant 0 : index
    %7 = vector.load %arg11[%c0_13, %c0_14] : memref<8x1xf32, #tpu.memory_space<vmem>>, vector<8x1xf32>
    %c0_15 = arith.constant 0 : index
    %c0_16 = arith.constant 0 : index
    %8 = vector.load %arg12[%c0_15, %c0_16] : memref<1x1xf32, #tpu.memory_space<vmem>>, vector<1x1xf32>
    %c0_17 = arith.constant 0 : index
    %c0_18 = arith.constant 0 : index
    %9 = vector.load %arg0[%c0_17, %c0_18] : memref<64x4xf32, #tpu.memory_space<vmem>>, vector<64x4xf32>
    %cst = arith.constant dense<0.000000e+00> : vector<64x128xf32>
    %10 = tpu.matmul %9, %0, %cst {dimension_numbers = #tpu.dot_dimension_numbers<[1], [0], [0], [1], [0, 0, 1, 1], [], []>} : vector<64x4xf32>, vector<4x128xf32>, vector<64x128xf32> -> vector<64x128xf32>
    %11 = vector.broadcast %2 : vector<1x128xf32> to vector<64x128xf32>
    %12 = arith.addf %10, %11 : vector<64x128xf32>
    %c0_19 = arith.constant 0 : index
    %c0_20 = arith.constant 0 : index
    %c0_21 = arith.constant 0 : index
    %13 = vector.load %arg1[%c0_19, %c0_20, %c0_21] : memref<2x2x32xf32, #tpu.memory_space<vmem>>, vector<1x2x32xf32>
    %14 = vector.shape_cast %13 : vector<1x2x32xf32> to vector<2x32xf32>
    %c0_22 = arith.constant 0 : index
    %c0_23 = arith.constant 0 : index
    %c0_24 = arith.constant 0 : index
    %15 = vector.load %arg2[%c0_22, %c0_23, %c0_24] : memref<2x2x32xf32, #tpu.memory_space<vmem>>, vector<1x2x32xf32>
    %16 = vector.shape_cast %15 : vector<1x2x32xf32> to vector<2x32xf32>
    %c1 = arith.constant 1 : index
    %c0_25 = arith.constant 0 : index
    %c0_26 = arith.constant 0 : index
    %17 = vector.load %arg1[%c1, %c0_25, %c0_26] : memref<2x2x32xf32, #tpu.memory_space<vmem>>, vector<1x2x32xf32>
    %18 = vector.shape_cast %17 : vector<1x2x32xf32> to vector<2x32xf32>
    %c1_27 = arith.constant 1 : index
    %c0_28 = arith.constant 0 : index
    %c0_29 = arith.constant 0 : index
    %19 = vector.load %arg2[%c1_27, %c0_28, %c0_29] : memref<2x2x32xf32, #tpu.memory_space<vmem>>, vector<1x2x32xf32>
    %20 = vector.shape_cast %19 : vector<1x2x32xf32> to vector<2x32xf32>
    %cst_30 = arith.constant 0.000000e+00 : f32
    %21 = vector.broadcast %cst_30 : f32 to vector<2x8xf32>
    %22 = vector.broadcast %6 : vector<1x8xf32> to vector<2x8xf32>
    %23 = arith.addf %21, %22 : vector<2x8xf32>
    %24 = vector.extract_strided_slice %12 {offsets = [0, 0], sizes = [2, 128], strides = [1, 1]} : vector<64x128xf32> to vector<2x128xf32>
    %cst_31 = arith.constant dense<0.000000e+00> : vector<2x128xf32>
    %25 = tpu.matmul %14, %1, %cst_31 {dimension_numbers = #tpu.dot_dimension_numbers<[1], [0], [0], [1], [0, 0, 1, 1], [], []>} : vector<2x32xf32>, vector<32x128xf32>, vector<2x128xf32> -> vector<2x128xf32>
    %26 = arith.addf %24, %25 : vector<2x128xf32>
    %27 = arith.negf %26 : vector<2x128xf32>
    %28 = math.exp %27 : vector<2x128xf32>
    %cst_32 = arith.constant 1.000000e+00 : f32
    %29 = vector.broadcast %cst_32 : f32 to vector<2x128xf32>
    %30 = arith.addf %29, %28 : vector<2x128xf32>
    %31 = arith.divf %29, %30 : vector<2x128xf32>
    %32 = vector.extract_strided_slice %31 {offsets = [0, 0], sizes = [2, 32], strides = [1, 1]} : vector<2x128xf32> to vector<2x32xf32>
    %33 = vector.extract_strided_slice %31 {offsets = [0, 32], sizes = [2, 32], strides = [1, 1]} : vector<2x128xf32> to vector<2x32xf32>
    %34 = vector.extract_strided_slice %31 {offsets = [0, 64], sizes = [2, 32], strides = [1, 1]} : vector<2x128xf32> to vector<2x32xf32>
    %cst_33 = arith.constant 2.000000e+00 : f32
    %35 = vector.broadcast %cst_33 : f32 to vector<2x32xf32>
    %36 = arith.mulf %35, %34 : vector<2x32xf32>
    %cst_34 = arith.constant 1.000000e+00 : f32
    %37 = vector.broadcast %cst_34 : f32 to vector<2x32xf32>
    %38 = arith.subf %36, %37 : vector<2x32xf32>
    %39 = vector.extract_strided_slice %31 {offsets = [0, 96], sizes = [2, 32], strides = [1, 1]} : vector<2x128xf32> to vector<2x32xf32>
    %40 = arith.mulf %33, %16 : vector<2x32xf32>
    %41 = arith.mulf %32, %38 : vector<2x32xf32>
    %42 = arith.addf %40, %41 : vector<2x32xf32>
    %cst_35 = arith.constant 2.000000e+00 : f32
    %43 = vector.broadcast %cst_35 : f32 to vector<2x32xf32>
    %44 = arith.mulf %43, %42 : vector<2x32xf32>
    %45 = arith.negf %44 : vector<2x32xf32>
    %46 = math.exp %45 : vector<2x32xf32>
    %cst_36 = arith.constant 1.000000e+00 : f32
    %47 = vector.broadcast %cst_36 : f32 to vector<2x32xf32>
    %48 = arith.addf %47, %46 : vector<2x32xf32>
    %49 = arith.divf %47, %48 : vector<2x32xf32>
    %cst_37 = arith.constant 2.000000e+00 : f32
    %50 = vector.broadcast %cst_37 : f32 to vector<2x32xf32>
    %51 = arith.mulf %50, %49 : vector<2x32xf32>
    %cst_38 = arith.constant 1.000000e+00 : f32
    %52 = vector.broadcast %cst_38 : f32 to vector<2x32xf32>
    %53 = arith.subf %51, %52 : vector<2x32xf32>
    %54 = arith.mulf %39, %53 : vector<2x32xf32>
    %cst_39 = arith.constant dense<0.000000e+00> : vector<2x128xf32>
    %55 = tpu.matmul %54, %3, %cst_39 {dimension_numbers = #tpu.dot_dimension_numbers<[1], [0], [0], [1], [0, 0, 1, 1], [], []>} : vector<2x32xf32>, vector<32x128xf32>, vector<2x128xf32> -> vector<2x128xf32>
    %cst_40 = arith.constant dense<0.000000e+00> : vector<2x128xf32>
    %56 = tpu.matmul %18, %4, %cst_40 {dimension_numbers = #tpu.dot_dimension_numbers<[1], [0], [0], [1], [0, 0, 1, 1], [], []>} : vector<2x32xf32>, vector<32x128xf32>, vector<2x128xf32> -> vector<2x128xf32>
    %57 = arith.addf %55, %56 : vector<2x128xf32>
    %58 = vector.broadcast %5 : vector<1x128xf32> to vector<2x128xf32>
    %59 = arith.addf %57, %58 : vector<2x128xf32>
    %60 = arith.negf %59 : vector<2x128xf32>
    %61 = math.exp %60 : vector<2x128xf32>
    %cst_41 = arith.constant 1.000000e+00 : f32
    %62 = vector.broadcast %cst_41 : f32 to vector<2x128xf32>
    %63 = arith.addf %62, %61 : vector<2x128xf32>
    %64 = arith.divf %62, %63 : vector<2x128xf32>
    %65 = vector.extract_strided_slice %64 {offsets = [0, 0], sizes = [2, 32], strides = [1, 1]} : vector<2x128xf32> to vector<2x32xf32>
    %66 = vector.extract_strided_slice %64 {offsets = [0, 32], sizes = [2, 32], strides = [1, 1]} : vector<2x128xf32> to vector<2x32xf32>
    %67 = vector.extract_strided_slice %64 {offsets = [0, 64], sizes = [2, 32], strides = [1, 1]} : vector<2x128xf32> to vector<2x32xf32>
    %cst_42 = arith.constant 2.000000e+00 : f32
    %68 = vector.broadcast %cst_42 : f32 to vector<2x32xf32>
    %69 = arith.mulf %68, %67 : vector<2x32xf32>
    %cst_43 = arith.constant 1.000000e+00 : f32
    %70 = vector.broadcast %cst_43 : f32 to vector<2x32xf32>
    %71 = arith.subf %69, %70 : vector<2x32xf32>
    %72 = vector.extract_strided_slice %64 {offsets = [0, 96], sizes = [2, 32], strides = [1, 1]} : vector<2x128xf32> to vector<2x32xf32>
    %73 = arith.mulf %66, %20 : vector<2x32xf32>
    %74 = arith.mulf %65, %71 : vector<2x32xf32>
    %75 = arith.addf %73, %74 : vector<2x32xf32>
    %cst_44 = arith.constant 2.000000e+00 : f32
    %76 = vector.broadcast %cst_44 : f32 to vector<2x32xf32>
    %77 = arith.mulf %76, %75 : vector<2x32xf32>
    %78 = arith.negf %77 : vector<2x32xf32>
    %79 = math.exp %78 : vector<2x32xf32>
    %cst_45 = arith.constant 1.000000e+00 : f32
    %80 = vector.broadcast %cst_45 : f32 to vector<2x32xf32>
    %81 = arith.addf %80, %79 : vector<2x32xf32>
    %82 = arith.divf %80, %81 : vector<2x32xf32>
    %cst_46 = arith.constant 2.000000e+00 : f32
    %83 = vector.broadcast %cst_46 : f32 to vector<2x32xf32>
    %84 = arith.mulf %83, %82 : vector<2x32xf32>
    %cst_47 = arith.constant 1.000000e+00 : f32
    %85 = vector.broadcast %cst_47 : f32 to vector<2x32xf32>
    %86 = arith.subf %84, %85 : vector<2x32xf32>
    %87 = arith.mulf %72, %86 : vector<2x32xf32>
    %c0_48 = arith.constant 0 : index
    %c0_49 = arith.constant 0 : index
    %88 = vector.load %arg9[%c0_48, %c0_49] : memref<256x8xf32, #tpu.memory_space<vmem>>, vector<32x8xf32>
    %cst_50 = arith.constant dense<0.000000e+00> : vector<2x8xf32>
    %89 = tpu.matmul %87, %88, %cst_50 {dimension_numbers = #tpu.dot_dimension_numbers<[1], [0], [0], [1], [0, 0, 1, 1], [], []>} : vector<2x32xf32>, vector<32x8xf32>, vector<2x8xf32> -> vector<2x8xf32>
    %90 = arith.addf %23, %89 : vector<2x8xf32>
    %91 = vector.extract_strided_slice %12 {offsets = [8, 0], sizes = [2, 128], strides = [1, 1]} : vector<64x128xf32> to vector<2x128xf32>
    %cst_51 = arith.constant dense<0.000000e+00> : vector<2x128xf32>
    %92 = tpu.matmul %54, %1, %cst_51 {dimension_numbers = #tpu.dot_dimension_numbers<[1], [0], [0], [1], [0, 0, 1, 1], [], []>} : vector<2x32xf32>, vector<32x128xf32>, vector<2x128xf32> -> vector<2x128xf32>
    %93 = arith.addf %91, %92 : vector<2x128xf32>
    %94 = arith.negf %93 : vector<2x128xf32>
    %95 = math.exp %94 : vector<2x128xf32>
    %cst_52 = arith.constant 1.000000e+00 : f32
    %96 = vector.broadcast %cst_52 : f32 to vector<2x128xf32>
    %97 = arith.addf %96, %95 : vector<2x128xf32>
    %98 = arith.divf %96, %97 : vector<2x128xf32>
    %99 = vector.extract_strided_slice %98 {offsets = [0, 0], sizes = [2, 32], strides = [1, 1]} : vector<2x128xf32> to vector<2x32xf32>
    %100 = vector.extract_strided_slice %98 {offsets = [0, 32], sizes = [2, 32], strides = [1, 1]} : vector<2x128xf32> to vector<2x32xf32>
    %101 = vector.extract_strided_slice %98 {offsets = [0, 64], sizes = [2, 32], strides = [1, 1]} : vector<2x128xf32> to vector<2x32xf32>
    %cst_53 = arith.constant 2.000000e+00 : f32
    %102 = vector.broadcast %cst_53 : f32 to vector<2x32xf32>
    %103 = arith.mulf %102, %101 : vector<2x32xf32>
    %cst_54 = arith.constant 1.000000e+00 : f32
    %104 = vector.broadcast %cst_54 : f32 to vector<2x32xf32>
    %105 = arith.subf %103, %104 : vector<2x32xf32>
    %106 = vector.extract_strided_slice %98 {offsets = [0, 96], sizes = [2, 32], strides = [1, 1]} : vector<2x128xf32> to vector<2x32xf32>
    %107 = arith.mulf %100, %42 : vector<2x32xf32>
    %108 = arith.mulf %99, %105 : vector<2x32xf32>
    %109 = arith.addf %107, %108 : vector<2x32xf32>
    %cst_55 = arith.constant 2.000000e+00 : f32
    %110 = vector.broadcast %cst_55 : f32 to vector<2x32xf32>
    %111 = arith.mulf %110, %109 : vector<2x32xf32>
    %112 = arith.negf %111 : vector<2x32xf32>
    %113 = math.exp %112 : vector<2x32xf32>
    %cst_56 = arith.constant 1.000000e+00 : f32
    %114 = vector.broadcast %cst_56 : f32 to vector<2x32xf32>
    %115 = arith.addf %114, %113 : vector<2x32xf32>
    %116 = arith.divf %114, %115 : vector<2x32xf32>
    %cst_57 = arith.constant 2.000000e+00 : f32
    %117 = vector.broadcast %cst_57 : f32 to vector<2x32xf32>
    %118 = arith.mulf %117, %116 : vector<2x32xf32>
    %cst_58 = arith.constant 1.000000e+00 : f32
    %119 = vector.broadcast %cst_58 : f32 to vector<2x32xf32>
    %120 = arith.subf %118, %119 : vector<2x32xf32>
    %121 = arith.mulf %106, %120 : vector<2x32xf32>
    %cst_59 = arith.constant dense<0.000000e+00> : vector<2x128xf32>
    %122 = tpu.matmul %121, %3, %cst_59 {dimension_numbers = #tpu.dot_dimension_numbers<[1], [0], [0], [1], [0, 0, 1, 1], [], []>} : vector<2x32xf32>, vector<32x128xf32>, vector<2x128xf32> -> vector<2x128xf32>
    %cst_60 = arith.constant dense<0.000000e+00> : vector<2x128xf32>
    %123 = tpu.matmul %87, %4, %cst_60 {dimension_numbers = #tpu.dot_dimension_numbers<[1], [0], [0], [1], [0, 0, 1, 1], [], []>} : vector<2x32xf32>, vector<32x128xf32>, vector<2x128xf32> -> vector<2x128xf32>
    %124 = arith.addf %122, %123 : vector<2x128xf32>
    %125 = vector.broadcast %5 : vector<1x128xf32> to vector<2x128xf32>
    %126 = arith.addf %124, %125 : vector<2x128xf32>
    %127 = arith.negf %126 : vector<2x128xf32>
    %128 = math.exp %127 : vector<2x128xf32>
    %cst_61 = arith.constant 1.000000e+00 : f32
    %129 = vector.broadcast %cst_61 : f32 to vector<2x128xf32>
    %130 = arith.addf %129, %128 : vector<2x128xf32>
    %131 = arith.divf %129, %130 : vector<2x128xf32>
    %132 = vector.extract_strided_slice %131 {offsets = [0, 0], sizes = [2, 32], strides = [1, 1]} : vector<2x128xf32> to vector<2x32xf32>
    %133 = vector.extract_strided_slice %131 {offsets = [0, 32], sizes = [2, 32], strides = [1, 1]} : vector<2x128xf32> to vector<2x32xf32>
    %134 = vector.extract_strided_slice %131 {offsets = [0, 64], sizes = [2, 32], strides = [1, 1]} : vector<2x128xf32> to vector<2x32xf32>
    %cst_62 = arith.constant 2.000000e+00 : f32
    %135 = vector.broadcast %cst_62 : f32 to vector<2x32xf32>
    %136 = arith.mulf %135, %134 : vector<2x32xf32>
    %cst_63 = arith.constant 1.000000e+00 : f32
    %137 = vector.broadcast %cst_63 : f32 to vector<2x32xf32>
    %138 = arith.subf %136, %137 : vector<2x32xf32>
    %139 = vector.extract_strided_slice %131 {offsets = [0, 96], sizes = [2, 32], strides = [1, 1]} : vector<2x128xf32> to vector<2x32xf32>
    %140 = arith.mulf %133, %75 : vector<2x32xf32>
    %141 = arith.mulf %132, %138 : vector<2x32xf32>
    %142 = arith.addf %140, %141 : vector<2x32xf32>
    %cst_64 = arith.constant 2.000000e+00 : f32
    %143 = vector.broadcast %cst_64 : f32 to vector<2x32xf32>
    %144 = arith.mulf %143, %142 : vector<2x32xf32>
    %145 = arith.negf %144 : vector<2x32xf32>
    %146 = math.exp %145 : vector<2x32xf32>
    %cst_65 = arith.constant 1.000000e+00 : f32
    %147 = vector.broadcast %cst_65 : f32 to vector<2x32xf32>
    %148 = arith.addf %147, %146 : vector<2x32xf32>
    %149 = arith.divf %147, %148 : vector<2x32xf32>
    %cst_66 = arith.constant 2.000000e+00 : f32
    %150 = vector.broadcast %cst_66 : f32 to vector<2x32xf32>
    %151 = arith.mulf %150, %149 : vector<2x32xf32>
    %cst_67 = arith.constant 1.000000e+00 : f32
    %152 = vector.broadcast %cst_67 : f32 to vector<2x32xf32>
    %153 = arith.subf %151, %152 : vector<2x32xf32>
    %154 = arith.mulf %139, %153 : vector<2x32xf32>
    %c32 = arith.constant 32 : index
    %c0_68 = arith.constant 0 : index
    %155 = vector.load %arg9[%c32, %c0_68] : memref<256x8xf32, #tpu.memory_space<vmem>>, vector<32x8xf32>
    %cst_69 = arith.constant dense<0.000000e+00> : vector<2x8xf32>
    %156 = tpu.matmul %154, %155, %cst_69 {dimension_numbers = #tpu.dot_dimension_numbers<[1], [0], [0], [1], [0, 0, 1, 1], [], []>} : vector<2x32xf32>, vector<32x8xf32>, vector<2x8xf32> -> vector<2x8xf32>
    %157 = arith.addf %90, %156 : vector<2x8xf32>
    %158 = vector.extract_strided_slice %12 {offsets = [16, 0], sizes = [2, 128], strides = [1, 1]} : vector<64x128xf32> to vector<2x128xf32>
    %cst_70 = arith.constant dense<0.000000e+00> : vector<2x128xf32>
    %159 = tpu.matmul %121, %1, %cst_70 {dimension_numbers = #tpu.dot_dimension_numbers<[1], [0], [0], [1], [0, 0, 1, 1], [], []>} : vector<2x32xf32>, vector<32x128xf32>, vector<2x128xf32> -> vector<2x128xf32>
    %160 = arith.addf %158, %159 : vector<2x128xf32>
    %161 = arith.negf %160 : vector<2x128xf32>
    %162 = math.exp %161 : vector<2x128xf32>
    %cst_71 = arith.constant 1.000000e+00 : f32
    %163 = vector.broadcast %cst_71 : f32 to vector<2x128xf32>
    %164 = arith.addf %163, %162 : vector<2x128xf32>
    %165 = arith.divf %163, %164 : vector<2x128xf32>
    %166 = vector.extract_strided_slice %165 {offsets = [0, 0], sizes = [2, 32], strides = [1, 1]} : vector<2x128xf32> to vector<2x32xf32>
    %167 = vector.extract_strided_slice %165 {offsets = [0, 32], sizes = [2, 32], strides = [1, 1]} : vector<2x128xf32> to vector<2x32xf32>
    %168 = vector.extract_strided_slice %165 {offsets = [0, 64], sizes = [2, 32], strides = [1, 1]} : vector<2x128xf32> to vector<2x32xf32>
    %cst_72 = arith.constant 2.000000e+00 : f32
    %169 = vector.broadcast %cst_72 : f32 to vector<2x32xf32>
    %170 = arith.mulf %169, %168 : vector<2x32xf32>
    %cst_73 = arith.constant 1.000000e+00 : f32
    %171 = vector.broadcast %cst_73 : f32 to vector<2x32xf32>
    %172 = arith.subf %170, %171 : vector<2x32xf32>
    %173 = vector.extract_strided_slice %165 {offsets = [0, 96], sizes = [2, 32], strides = [1, 1]} : vector<2x128xf32> to vector<2x32xf32>
    %174 = arith.mulf %167, %109 : vector<2x32xf32>
    %175 = arith.mulf %166, %172 : vector<2x32xf32>
    %176 = arith.addf %174, %175 : vector<2x32xf32>
    %cst_74 = arith.constant 2.000000e+00 : f32
    %177 = vector.broadcast %cst_74 : f32 to vector<2x32xf32>
    %178 = arith.mulf %177, %176 : vector<2x32xf32>
    %179 = arith.negf %178 : vector<2x32xf32>
    %180 = math.exp %179 : vector<2x32xf32>
    %cst_75 = arith.constant 1.000000e+00 : f32
    %181 = vector.broadcast %cst_75 : f32 to vector<2x32xf32>
    %182 = arith.addf %181, %180 : vector<2x32xf32>
    %183 = arith.divf %181, %182 : vector<2x32xf32>
    %cst_76 = arith.constant 2.000000e+00 : f32
    %184 = vector.broadcast %cst_76 : f32 to vector<2x32xf32>
    %185 = arith.mulf %184, %183 : vector<2x32xf32>
    %cst_77 = arith.constant 1.000000e+00 : f32
    %186 = vector.broadcast %cst_77 : f32 to vector<2x32xf32>
    %187 = arith.subf %185, %186 : vector<2x32xf32>
    %188 = arith.mulf %173, %187 : vector<2x32xf32>
    %cst_78 = arith.constant dense<0.000000e+00> : vector<2x128xf32>
    %189 = tpu.matmul %188, %3, %cst_78 {dimension_numbers = #tpu.dot_dimension_numbers<[1], [0], [0], [1], [0, 0, 1, 1], [], []>} : vector<2x32xf32>, vector<32x128xf32>, vector<2x128xf32> -> vector<2x128xf32>
    %cst_79 = arith.constant dense<0.000000e+00> : vector<2x128xf32>
    %190 = tpu.matmul %154, %4, %cst_79 {dimension_numbers = #tpu.dot_dimension_numbers<[1], [0], [0], [1], [0, 0, 1, 1], [], []>} : vector<2x32xf32>, vector<32x128xf32>, vector<2x128xf32> -> vector<2x128xf32>
    %191 = arith.addf %189, %190 : vector<2x128xf32>
    %192 = vector.broadcast %5 : vector<1x128xf32> to vector<2x128xf32>
    %193 = arith.addf %191, %192 : vector<2x128xf32>
    %194 = arith.negf %193 : vector<2x128xf32>
    %195 = math.exp %194 : vector<2x128xf32>
    %cst_80 = arith.constant 1.000000e+00 : f32
    %196 = vector.broadcast %cst_80 : f32 to vector<2x128xf32>
    %197 = arith.addf %196, %195 : vector<2x128xf32>
    %198 = arith.divf %196, %197 : vector<2x128xf32>
    %199 = vector.extract_strided_slice %198 {offsets = [0, 0], sizes = [2, 32], strides = [1, 1]} : vector<2x128xf32> to vector<2x32xf32>
    %200 = vector.extract_strided_slice %198 {offsets = [0, 32], sizes = [2, 32], strides = [1, 1]} : vector<2x128xf32> to vector<2x32xf32>
    %201 = vector.extract_strided_slice %198 {offsets = [0, 64], sizes = [2, 32], strides = [1, 1]} : vector<2x128xf32> to vector<2x32xf32>
    %cst_81 = arith.constant 2.000000e+00 : f32
    %202 = vector.broadcast %cst_81 : f32 to vector<2x32xf32>
    %203 = arith.mulf %202, %201 : vector<2x32xf32>
    %cst_82 = arith.constant 1.000000e+00 : f32
    %204 = vector.broadcast %cst_82 : f32 to vector<2x32xf32>
    %205 = arith.subf %203, %204 : vector<2x32xf32>
    %206 = vector.extract_strided_slice %198 {offsets = [0, 96], sizes = [2, 32], strides = [1, 1]} : vector<2x128xf32> to vector<2x32xf32>
    %207 = arith.mulf %200, %142 : vector<2x32xf32>
    %208 = arith.mulf %199, %205 : vector<2x32xf32>
    %209 = arith.addf %207, %208 : vector<2x32xf32>
    %cst_83 = arith.constant 2.000000e+00 : f32
    %210 = vector.broadcast %cst_83 : f32 to vector<2x32xf32>
    %211 = arith.mulf %210, %209 : vector<2x32xf32>
    %212 = arith.negf %211 : vector<2x32xf32>
    %213 = math.exp %212 : vector<2x32xf32>
    %cst_84 = arith.constant 1.000000e+00 : f32
    %214 = vector.broadcast %cst_84 : f32 to vector<2x32xf32>
    %215 = arith.addf %214, %213 : vector<2x32xf32>
    %216 = arith.divf %214, %215 : vector<2x32xf32>
    %cst_85 = arith.constant 2.000000e+00 : f32
    %217 = vector.broadcast %cst_85 : f32 to vector<2x32xf32>
    %218 = arith.mulf %217, %216 : vector<2x32xf32>
    %cst_86 = arith.constant 1.000000e+00 : f32
    %219 = vector.broadcast %cst_86 : f32 to vector<2x32xf32>
    %220 = arith.subf %218, %219 : vector<2x32xf32>
    %221 = arith.mulf %206, %220 : vector<2x32xf32>
    %c64 = arith.constant 64 : index
    %c0_87 = arith.constant 0 : index
    %222 = vector.load %arg9[%c64, %c0_87] : memref<256x8xf32, #tpu.memory_space<vmem>>, vector<32x8xf32>
    %cst_88 = arith.constant dense<0.000000e+00> : vector<2x8xf32>
    %223 = tpu.matmul %221, %222, %cst_88 {dimension_numbers = #tpu.dot_dimension_numbers<[1], [0], [0], [1], [0, 0, 1, 1], [], []>} : vector<2x32xf32>, vector<32x8xf32>, vector<2x8xf32> -> vector<2x8xf32>
    %224 = arith.addf %157, %223 : vector<2x8xf32>
    %225 = vector.extract_strided_slice %12 {offsets = [24, 0], sizes = [2, 128], strides = [1, 1]} : vector<64x128xf32> to vector<2x128xf32>
    %cst_89 = arith.constant dense<0.000000e+00> : vector<2x128xf32>
    %226 = tpu.matmul %188, %1, %cst_89 {dimension_numbers = #tpu.dot_dimension_numbers<[1], [0], [0], [1], [0, 0, 1, 1], [], []>} : vector<2x32xf32>, vector<32x128xf32>, vector<2x128xf32> -> vector<2x128xf32>
    %227 = arith.addf %225, %226 : vector<2x128xf32>
    %228 = arith.negf %227 : vector<2x128xf32>
    %229 = math.exp %228 : vector<2x128xf32>
    %cst_90 = arith.constant 1.000000e+00 : f32
    %230 = vector.broadcast %cst_90 : f32 to vector<2x128xf32>
    %231 = arith.addf %230, %229 : vector<2x128xf32>
    %232 = arith.divf %230, %231 : vector<2x128xf32>
    %233 = vector.extract_strided_slice %232 {offsets = [0, 0], sizes = [2, 32], strides = [1, 1]} : vector<2x128xf32> to vector<2x32xf32>
    %234 = vector.extract_strided_slice %232 {offsets = [0, 32], sizes = [2, 32], strides = [1, 1]} : vector<2x128xf32> to vector<2x32xf32>
    %235 = vector.extract_strided_slice %232 {offsets = [0, 64], sizes = [2, 32], strides = [1, 1]} : vector<2x128xf32> to vector<2x32xf32>
    %cst_91 = arith.constant 2.000000e+00 : f32
    %236 = vector.broadcast %cst_91 : f32 to vector<2x32xf32>
    %237 = arith.mulf %236, %235 : vector<2x32xf32>
    %cst_92 = arith.constant 1.000000e+00 : f32
    %238 = vector.broadcast %cst_92 : f32 to vector<2x32xf32>
    %239 = arith.subf %237, %238 : vector<2x32xf32>
    %240 = vector.extract_strided_slice %232 {offsets = [0, 96], sizes = [2, 32], strides = [1, 1]} : vector<2x128xf32> to vector<2x32xf32>
    %241 = arith.mulf %234, %176 : vector<2x32xf32>
    %242 = arith.mulf %233, %239 : vector<2x32xf32>
    %243 = arith.addf %241, %242 : vector<2x32xf32>
    %cst_93 = arith.constant 2.000000e+00 : f32
    %244 = vector.broadcast %cst_93 : f32 to vector<2x32xf32>
    %245 = arith.mulf %244, %243 : vector<2x32xf32>
    %246 = arith.negf %245 : vector<2x32xf32>
    %247 = math.exp %246 : vector<2x32xf32>
    %cst_94 = arith.constant 1.000000e+00 : f32
    %248 = vector.broadcast %cst_94 : f32 to vector<2x32xf32>
    %249 = arith.addf %248, %247 : vector<2x32xf32>
    %250 = arith.divf %248, %249 : vector<2x32xf32>
    %cst_95 = arith.constant 2.000000e+00 : f32
    %251 = vector.broadcast %cst_95 : f32 to vector<2x32xf32>
    %252 = arith.mulf %251, %250 : vector<2x32xf32>
    %cst_96 = arith.constant 1.000000e+00 : f32
    %253 = vector.broadcast %cst_96 : f32 to vector<2x32xf32>
    %254 = arith.subf %252, %253 : vector<2x32xf32>
    %255 = arith.mulf %240, %254 : vector<2x32xf32>
    %cst_97 = arith.constant dense<0.000000e+00> : vector<2x128xf32>
    %256 = tpu.matmul %255, %3, %cst_97 {dimension_numbers = #tpu.dot_dimension_numbers<[1], [0], [0], [1], [0, 0, 1, 1], [], []>} : vector<2x32xf32>, vector<32x128xf32>, vector<2x128xf32> -> vector<2x128xf32>
    %cst_98 = arith.constant dense<0.000000e+00> : vector<2x128xf32>
    %257 = tpu.matmul %221, %4, %cst_98 {dimension_numbers = #tpu.dot_dimension_numbers<[1], [0], [0], [1], [0, 0, 1, 1], [], []>} : vector<2x32xf32>, vector<32x128xf32>, vector<2x128xf32> -> vector<2x128xf32>
    %258 = arith.addf %256, %257 : vector<2x128xf32>
    %259 = vector.broadcast %5 : vector<1x128xf32> to vector<2x128xf32>
    %260 = arith.addf %258, %259 : vector<2x128xf32>
    %261 = arith.negf %260 : vector<2x128xf32>
    %262 = math.exp %261 : vector<2x128xf32>
    %cst_99 = arith.constant 1.000000e+00 : f32
    %263 = vector.broadcast %cst_99 : f32 to vector<2x128xf32>
    %264 = arith.addf %263, %262 : vector<2x128xf32>
    %265 = arith.divf %263, %264 : vector<2x128xf32>
    %266 = vector.extract_strided_slice %265 {offsets = [0, 0], sizes = [2, 32], strides = [1, 1]} : vector<2x128xf32> to vector<2x32xf32>
    %267 = vector.extract_strided_slice %265 {offsets = [0, 32], sizes = [2, 32], strides = [1, 1]} : vector<2x128xf32> to vector<2x32xf32>
    %268 = vector.extract_strided_slice %265 {offsets = [0, 64], sizes = [2, 32], strides = [1, 1]} : vector<2x128xf32> to vector<2x32xf32>
    %cst_100 = arith.constant 2.000000e+00 : f32
    %269 = vector.broadcast %cst_100 : f32 to vector<2x32xf32>
    %270 = arith.mulf %269, %268 : vector<2x32xf32>
    %cst_101 = arith.constant 1.000000e+00 : f32
    %271 = vector.broadcast %cst_101 : f32 to vector<2x32xf32>
    %272 = arith.subf %270, %271 : vector<2x32xf32>
    %273 = vector.extract_strided_slice %265 {offsets = [0, 96], sizes = [2, 32], strides = [1, 1]} : vector<2x128xf32> to vector<2x32xf32>
    %274 = arith.mulf %267, %209 : vector<2x32xf32>
    %275 = arith.mulf %266, %272 : vector<2x32xf32>
    %276 = arith.addf %274, %275 : vector<2x32xf32>
    %cst_102 = arith.constant 2.000000e+00 : f32
    %277 = vector.broadcast %cst_102 : f32 to vector<2x32xf32>
    %278 = arith.mulf %277, %276 : vector<2x32xf32>
    %279 = arith.negf %278 : vector<2x32xf32>
    %280 = math.exp %279 : vector<2x32xf32>
    %cst_103 = arith.constant 1.000000e+00 : f32
    %281 = vector.broadcast %cst_103 : f32 to vector<2x32xf32>
    %282 = arith.addf %281, %280 : vector<2x32xf32>
    %283 = arith.divf %281, %282 : vector<2x32xf32>
    %cst_104 = arith.constant 2.000000e+00 : f32
    %284 = vector.broadcast %cst_104 : f32 to vector<2x32xf32>
    %285 = arith.mulf %284, %283 : vector<2x32xf32>
    %cst_105 = arith.constant 1.000000e+00 : f32
    %286 = vector.broadcast %cst_105 : f32 to vector<2x32xf32>
    %287 = arith.subf %285, %286 : vector<2x32xf32>
    %288 = arith.mulf %273, %287 : vector<2x32xf32>
    %c96 = arith.constant 96 : index
    %c0_106 = arith.constant 0 : index
    %289 = vector.load %arg9[%c96, %c0_106] : memref<256x8xf32, #tpu.memory_space<vmem>>, vector<32x8xf32>
    %cst_107 = arith.constant dense<0.000000e+00> : vector<2x8xf32>
    %290 = tpu.matmul %288, %289, %cst_107 {dimension_numbers = #tpu.dot_dimension_numbers<[1], [0], [0], [1], [0, 0, 1, 1], [], []>} : vector<2x32xf32>, vector<32x8xf32>, vector<2x8xf32> -> vector<2x8xf32>
    %291 = arith.addf %224, %290 : vector<2x8xf32>
    %292 = vector.extract_strided_slice %12 {offsets = [32, 0], sizes = [2, 128], strides = [1, 1]} : vector<64x128xf32> to vector<2x128xf32>
    %cst_108 = arith.constant dense<0.000000e+00> : vector<2x128xf32>
    %293 = tpu.matmul %255, %1, %cst_108 {dimension_numbers = #tpu.dot_dimension_numbers<[1], [0], [0], [1], [0, 0, 1, 1], [], []>} : vector<2x32xf32>, vector<32x128xf32>, vector<2x128xf32> -> vector<2x128xf32>
    %294 = arith.addf %292, %293 : vector<2x128xf32>
    %295 = arith.negf %294 : vector<2x128xf32>
    %296 = math.exp %295 : vector<2x128xf32>
    %cst_109 = arith.constant 1.000000e+00 : f32
    %297 = vector.broadcast %cst_109 : f32 to vector<2x128xf32>
    %298 = arith.addf %297, %296 : vector<2x128xf32>
    %299 = arith.divf %297, %298 : vector<2x128xf32>
    %300 = vector.extract_strided_slice %299 {offsets = [0, 0], sizes = [2, 32], strides = [1, 1]} : vector<2x128xf32> to vector<2x32xf32>
    %301 = vector.extract_strided_slice %299 {offsets = [0, 32], sizes = [2, 32], strides = [1, 1]} : vector<2x128xf32> to vector<2x32xf32>
    %302 = vector.extract_strided_slice %299 {offsets = [0, 64], sizes = [2, 32], strides = [1, 1]} : vector<2x128xf32> to vector<2x32xf32>
    %cst_110 = arith.constant 2.000000e+00 : f32
    %303 = vector.broadcast %cst_110 : f32 to vector<2x32xf32>
    %304 = arith.mulf %303, %302 : vector<2x32xf32>
    %cst_111 = arith.constant 1.000000e+00 : f32
    %305 = vector.broadcast %cst_111 : f32 to vector<2x32xf32>
    %306 = arith.subf %304, %305 : vector<2x32xf32>
    %307 = vector.extract_strided_slice %299 {offsets = [0, 96], sizes = [2, 32], strides = [1, 1]} : vector<2x128xf32> to vector<2x32xf32>
    %308 = arith.mulf %301, %243 : vector<2x32xf32>
    %309 = arith.mulf %300, %306 : vector<2x32xf32>
    %310 = arith.addf %308, %309 : vector<2x32xf32>
    %cst_112 = arith.constant 2.000000e+00 : f32
    %311 = vector.broadcast %cst_112 : f32 to vector<2x32xf32>
    %312 = arith.mulf %311, %310 : vector<2x32xf32>
    %313 = arith.negf %312 : vector<2x32xf32>
    %314 = math.exp %313 : vector<2x32xf32>
    %cst_113 = arith.constant 1.000000e+00 : f32
    %315 = vector.broadcast %cst_113 : f32 to vector<2x32xf32>
    %316 = arith.addf %315, %314 : vector<2x32xf32>
    %317 = arith.divf %315, %316 : vector<2x32xf32>
    %cst_114 = arith.constant 2.000000e+00 : f32
    %318 = vector.broadcast %cst_114 : f32 to vector<2x32xf32>
    %319 = arith.mulf %318, %317 : vector<2x32xf32>
    %cst_115 = arith.constant 1.000000e+00 : f32
    %320 = vector.broadcast %cst_115 : f32 to vector<2x32xf32>
    %321 = arith.subf %319, %320 : vector<2x32xf32>
    %322 = arith.mulf %307, %321 : vector<2x32xf32>
    %cst_116 = arith.constant dense<0.000000e+00> : vector<2x128xf32>
    %323 = tpu.matmul %322, %3, %cst_116 {dimension_numbers = #tpu.dot_dimension_numbers<[1], [0], [0], [1], [0, 0, 1, 1], [], []>} : vector<2x32xf32>, vector<32x128xf32>, vector<2x128xf32> -> vector<2x128xf32>
    %cst_117 = arith.constant dense<0.000000e+00> : vector<2x128xf32>
    %324 = tpu.matmul %288, %4, %cst_117 {dimension_numbers = #tpu.dot_dimension_numbers<[1], [0], [0], [1], [0, 0, 1, 1], [], []>} : vector<2x32xf32>, vector<32x128xf32>, vector<2x128xf32> -> vector<2x128xf32>
    %325 = arith.addf %323, %324 : vector<2x128xf32>
    %326 = vector.broadcast %5 : vector<1x128xf32> to vector<2x128xf32>
    %327 = arith.addf %325, %326 : vector<2x128xf32>
    %328 = arith.negf %327 : vector<2x128xf32>
    %329 = math.exp %328 : vector<2x128xf32>
    %cst_118 = arith.constant 1.000000e+00 : f32
    %330 = vector.broadcast %cst_118 : f32 to vector<2x128xf32>
    %331 = arith.addf %330, %329 : vector<2x128xf32>
    %332 = arith.divf %330, %331 : vector<2x128xf32>
    %333 = vector.extract_strided_slice %332 {offsets = [0, 0], sizes = [2, 32], strides = [1, 1]} : vector<2x128xf32> to vector<2x32xf32>
    %334 = vector.extract_strided_slice %332 {offsets = [0, 32], sizes = [2, 32], strides = [1, 1]} : vector<2x128xf32> to vector<2x32xf32>
    %335 = vector.extract_strided_slice %332 {offsets = [0, 64], sizes = [2, 32], strides = [1, 1]} : vector<2x128xf32> to vector<2x32xf32>
    %cst_119 = arith.constant 2.000000e+00 : f32
    %336 = vector.broadcast %cst_119 : f32 to vector<2x32xf32>
    %337 = arith.mulf %336, %335 : vector<2x32xf32>
    %cst_120 = arith.constant 1.000000e+00 : f32
    %338 = vector.broadcast %cst_120 : f32 to vector<2x32xf32>
    %339 = arith.subf %337, %338 : vector<2x32xf32>
    %340 = vector.extract_strided_slice %332 {offsets = [0, 96], sizes = [2, 32], strides = [1, 1]} : vector<2x128xf32> to vector<2x32xf32>
    %341 = arith.mulf %334, %276 : vector<2x32xf32>
    %342 = arith.mulf %333, %339 : vector<2x32xf32>
    %343 = arith.addf %341, %342 : vector<2x32xf32>
    %cst_121 = arith.constant 2.000000e+00 : f32
    %344 = vector.broadcast %cst_121 : f32 to vector<2x32xf32>
    %345 = arith.mulf %344, %343 : vector<2x32xf32>
    %346 = arith.negf %345 : vector<2x32xf32>
    %347 = math.exp %346 : vector<2x32xf32>
    %cst_122 = arith.constant 1.000000e+00 : f32
    %348 = vector.broadcast %cst_122 : f32 to vector<2x32xf32>
    %349 = arith.addf %348, %347 : vector<2x32xf32>
    %350 = arith.divf %348, %349 : vector<2x32xf32>
    %cst_123 = arith.constant 2.000000e+00 : f32
    %351 = vector.broadcast %cst_123 : f32 to vector<2x32xf32>
    %352 = arith.mulf %351, %350 : vector<2x32xf32>
    %cst_124 = arith.constant 1.000000e+00 : f32
    %353 = vector.broadcast %cst_124 : f32 to vector<2x32xf32>
    %354 = arith.subf %352, %353 : vector<2x32xf32>
    %355 = arith.mulf %340, %354 : vector<2x32xf32>
    %c128 = arith.constant 128 : index
    %c0_125 = arith.constant 0 : index
    %356 = vector.load %arg9[%c128, %c0_125] : memref<256x8xf32, #tpu.memory_space<vmem>>, vector<32x8xf32>
    %cst_126 = arith.constant dense<0.000000e+00> : vector<2x8xf32>
    %357 = tpu.matmul %355, %356, %cst_126 {dimension_numbers = #tpu.dot_dimension_numbers<[1], [0], [0], [1], [0, 0, 1, 1], [], []>} : vector<2x32xf32>, vector<32x8xf32>, vector<2x8xf32> -> vector<2x8xf32>
    %358 = arith.addf %291, %357 : vector<2x8xf32>
    %359 = vector.extract_strided_slice %12 {offsets = [40, 0], sizes = [2, 128], strides = [1, 1]} : vector<64x128xf32> to vector<2x128xf32>
    %cst_127 = arith.constant dense<0.000000e+00> : vector<2x128xf32>
    %360 = tpu.matmul %322, %1, %cst_127 {dimension_numbers = #tpu.dot_dimension_numbers<[1], [0], [0], [1], [0, 0, 1, 1], [], []>} : vector<2x32xf32>, vector<32x128xf32>, vector<2x128xf32> -> vector<2x128xf32>
    %361 = arith.addf %359, %360 : vector<2x128xf32>
    %362 = arith.negf %361 : vector<2x128xf32>
    %363 = math.exp %362 : vector<2x128xf32>
    %cst_128 = arith.constant 1.000000e+00 : f32
    %364 = vector.broadcast %cst_128 : f32 to vector<2x128xf32>
    %365 = arith.addf %364, %363 : vector<2x128xf32>
    %366 = arith.divf %364, %365 : vector<2x128xf32>
    %367 = vector.extract_strided_slice %366 {offsets = [0, 0], sizes = [2, 32], strides = [1, 1]} : vector<2x128xf32> to vector<2x32xf32>
    %368 = vector.extract_strided_slice %366 {offsets = [0, 32], sizes = [2, 32], strides = [1, 1]} : vector<2x128xf32> to vector<2x32xf32>
    %369 = vector.extract_strided_slice %366 {offsets = [0, 64], sizes = [2, 32], strides = [1, 1]} : vector<2x128xf32> to vector<2x32xf32>
    %cst_129 = arith.constant 2.000000e+00 : f32
    %370 = vector.broadcast %cst_129 : f32 to vector<2x32xf32>
    %371 = arith.mulf %370, %369 : vector<2x32xf32>
    %cst_130 = arith.constant 1.000000e+00 : f32
    %372 = vector.broadcast %cst_130 : f32 to vector<2x32xf32>
    %373 = arith.subf %371, %372 : vector<2x32xf32>
    %374 = vector.extract_strided_slice %366 {offsets = [0, 96], sizes = [2, 32], strides = [1, 1]} : vector<2x128xf32> to vector<2x32xf32>
    %375 = arith.mulf %368, %310 : vector<2x32xf32>
    %376 = arith.mulf %367, %373 : vector<2x32xf32>
    %377 = arith.addf %375, %376 : vector<2x32xf32>
    %cst_131 = arith.constant 2.000000e+00 : f32
    %378 = vector.broadcast %cst_131 : f32 to vector<2x32xf32>
    %379 = arith.mulf %378, %377 : vector<2x32xf32>
    %380 = arith.negf %379 : vector<2x32xf32>
    %381 = math.exp %380 : vector<2x32xf32>
    %cst_132 = arith.constant 1.000000e+00 : f32
    %382 = vector.broadcast %cst_132 : f32 to vector<2x32xf32>
    %383 = arith.addf %382, %381 : vector<2x32xf32>
    %384 = arith.divf %382, %383 : vector<2x32xf32>
    %cst_133 = arith.constant 2.000000e+00 : f32
    %385 = vector.broadcast %cst_133 : f32 to vector<2x32xf32>
    %386 = arith.mulf %385, %384 : vector<2x32xf32>
    %cst_134 = arith.constant 1.000000e+00 : f32
    %387 = vector.broadcast %cst_134 : f32 to vector<2x32xf32>
    %388 = arith.subf %386, %387 : vector<2x32xf32>
    %389 = arith.mulf %374, %388 : vector<2x32xf32>
    %cst_135 = arith.constant dense<0.000000e+00> : vector<2x128xf32>
    %390 = tpu.matmul %389, %3, %cst_135 {dimension_numbers = #tpu.dot_dimension_numbers<[1], [0], [0], [1], [0, 0, 1, 1], [], []>} : vector<2x32xf32>, vector<32x128xf32>, vector<2x128xf32> -> vector<2x128xf32>
    %cst_136 = arith.constant dense<0.000000e+00> : vector<2x128xf32>
    %391 = tpu.matmul %355, %4, %cst_136 {dimension_numbers = #tpu.dot_dimension_numbers<[1], [0], [0], [1], [0, 0, 1, 1], [], []>} : vector<2x32xf32>, vector<32x128xf32>, vector<2x128xf32> -> vector<2x128xf32>
    %392 = arith.addf %390, %391 : vector<2x128xf32>
    %393 = vector.broadcast %5 : vector<1x128xf32> to vector<2x128xf32>
    %394 = arith.addf %392, %393 : vector<2x128xf32>
    %395 = arith.negf %394 : vector<2x128xf32>
    %396 = math.exp %395 : vector<2x128xf32>
    %cst_137 = arith.constant 1.000000e+00 : f32
    %397 = vector.broadcast %cst_137 : f32 to vector<2x128xf32>
    %398 = arith.addf %397, %396 : vector<2x128xf32>
    %399 = arith.divf %397, %398 : vector<2x128xf32>
    %400 = vector.extract_strided_slice %399 {offsets = [0, 0], sizes = [2, 32], strides = [1, 1]} : vector<2x128xf32> to vector<2x32xf32>
    %401 = vector.extract_strided_slice %399 {offsets = [0, 32], sizes = [2, 32], strides = [1, 1]} : vector<2x128xf32> to vector<2x32xf32>
    %402 = vector.extract_strided_slice %399 {offsets = [0, 64], sizes = [2, 32], strides = [1, 1]} : vector<2x128xf32> to vector<2x32xf32>
    %cst_138 = arith.constant 2.000000e+00 : f32
    %403 = vector.broadcast %cst_138 : f32 to vector<2x32xf32>
    %404 = arith.mulf %403, %402 : vector<2x32xf32>
    %cst_139 = arith.constant 1.000000e+00 : f32
    %405 = vector.broadcast %cst_139 : f32 to vector<2x32xf32>
    %406 = arith.subf %404, %405 : vector<2x32xf32>
    %407 = vector.extract_strided_slice %399 {offsets = [0, 96], sizes = [2, 32], strides = [1, 1]} : vector<2x128xf32> to vector<2x32xf32>
    %408 = arith.mulf %401, %343 : vector<2x32xf32>
    %409 = arith.mulf %400, %406 : vector<2x32xf32>
    %410 = arith.addf %408, %409 : vector<2x32xf32>
    %cst_140 = arith.constant 2.000000e+00 : f32
    %411 = vector.broadcast %cst_140 : f32 to vector<2x32xf32>
    %412 = arith.mulf %411, %410 : vector<2x32xf32>
    %413 = arith.negf %412 : vector<2x32xf32>
    %414 = math.exp %413 : vector<2x32xf32>
    %cst_141 = arith.constant 1.000000e+00 : f32
    %415 = vector.broadcast %cst_141 : f32 to vector<2x32xf32>
    %416 = arith.addf %415, %414 : vector<2x32xf32>
    %417 = arith.divf %415, %416 : vector<2x32xf32>
    %cst_142 = arith.constant 2.000000e+00 : f32
    %418 = vector.broadcast %cst_142 : f32 to vector<2x32xf32>
    %419 = arith.mulf %418, %417 : vector<2x32xf32>
    %cst_143 = arith.constant 1.000000e+00 : f32
    %420 = vector.broadcast %cst_143 : f32 to vector<2x32xf32>
    %421 = arith.subf %419, %420 : vector<2x32xf32>
    %422 = arith.mulf %407, %421 : vector<2x32xf32>
    %c160 = arith.constant 160 : index
    %c0_144 = arith.constant 0 : index
    %423 = vector.load %arg9[%c160, %c0_144] : memref<256x8xf32, #tpu.memory_space<vmem>>, vector<32x8xf32>
    %cst_145 = arith.constant dense<0.000000e+00> : vector<2x8xf32>
    %424 = tpu.matmul %422, %423, %cst_145 {dimension_numbers = #tpu.dot_dimension_numbers<[1], [0], [0], [1], [0, 0, 1, 1], [], []>} : vector<2x32xf32>, vector<32x8xf32>, vector<2x8xf32> -> vector<2x8xf32>
    %425 = arith.addf %358, %424 : vector<2x8xf32>
    %426 = vector.extract_strided_slice %12 {offsets = [48, 0], sizes = [2, 128], strides = [1, 1]} : vector<64x128xf32> to vector<2x128xf32>
    %cst_146 = arith.constant dense<0.000000e+00> : vector<2x128xf32>
    %427 = tpu.matmul %389, %1, %cst_146 {dimension_numbers = #tpu.dot_dimension_numbers<[1], [0], [0], [1], [0, 0, 1, 1], [], []>} : vector<2x32xf32>, vector<32x128xf32>, vector<2x128xf32> -> vector<2x128xf32>
    %428 = arith.addf %426, %427 : vector<2x128xf32>
    %429 = arith.negf %428 : vector<2x128xf32>
    %430 = math.exp %429 : vector<2x128xf32>
    %cst_147 = arith.constant 1.000000e+00 : f32
    %431 = vector.broadcast %cst_147 : f32 to vector<2x128xf32>
    %432 = arith.addf %431, %430 : vector<2x128xf32>
    %433 = arith.divf %431, %432 : vector<2x128xf32>
    %434 = vector.extract_strided_slice %433 {offsets = [0, 0], sizes = [2, 32], strides = [1, 1]} : vector<2x128xf32> to vector<2x32xf32>
    %435 = vector.extract_strided_slice %433 {offsets = [0, 32], sizes = [2, 32], strides = [1, 1]} : vector<2x128xf32> to vector<2x32xf32>
    %436 = vector.extract_strided_slice %433 {offsets = [0, 64], sizes = [2, 32], strides = [1, 1]} : vector<2x128xf32> to vector<2x32xf32>
    %cst_148 = arith.constant 2.000000e+00 : f32
    %437 = vector.broadcast %cst_148 : f32 to vector<2x32xf32>
    %438 = arith.mulf %437, %436 : vector<2x32xf32>
    %cst_149 = arith.constant 1.000000e+00 : f32
    %439 = vector.broadcast %cst_149 : f32 to vector<2x32xf32>
    %440 = arith.subf %438, %439 : vector<2x32xf32>
    %441 = vector.extract_strided_slice %433 {offsets = [0, 96], sizes = [2, 32], strides = [1, 1]} : vector<2x128xf32> to vector<2x32xf32>
    %442 = arith.mulf %435, %377 : vector<2x32xf32>
    %443 = arith.mulf %434, %440 : vector<2x32xf32>
    %444 = arith.addf %442, %443 : vector<2x32xf32>
    %cst_150 = arith.constant 2.000000e+00 : f32
    %445 = vector.broadcast %cst_150 : f32 to vector<2x32xf32>
    %446 = arith.mulf %445, %444 : vector<2x32xf32>
    %447 = arith.negf %446 : vector<2x32xf32>
    %448 = math.exp %447 : vector<2x32xf32>
    %cst_151 = arith.constant 1.000000e+00 : f32
    %449 = vector.broadcast %cst_151 : f32 to vector<2x32xf32>
    %450 = arith.addf %449, %448 : vector<2x32xf32>
    %451 = arith.divf %449, %450 : vector<2x32xf32>
    %cst_152 = arith.constant 2.000000e+00 : f32
    %452 = vector.broadcast %cst_152 : f32 to vector<2x32xf32>
    %453 = arith.mulf %452, %451 : vector<2x32xf32>
    %cst_153 = arith.constant 1.000000e+00 : f32
    %454 = vector.broadcast %cst_153 : f32 to vector<2x32xf32>
    %455 = arith.subf %453, %454 : vector<2x32xf32>
    %456 = arith.mulf %441, %455 : vector<2x32xf32>
    %cst_154 = arith.constant dense<0.000000e+00> : vector<2x128xf32>
    %457 = tpu.matmul %456, %3, %cst_154 {dimension_numbers = #tpu.dot_dimension_numbers<[1], [0], [0], [1], [0, 0, 1, 1], [], []>} : vector<2x32xf32>, vector<32x128xf32>, vector<2x128xf32> -> vector<2x128xf32>
    %cst_155 = arith.constant dense<0.000000e+00> : vector<2x128xf32>
    %458 = tpu.matmul %422, %4, %cst_155 {dimension_numbers = #tpu.dot_dimension_numbers<[1], [0], [0], [1], [0, 0, 1, 1], [], []>} : vector<2x32xf32>, vector<32x128xf32>, vector<2x128xf32> -> vector<2x128xf32>
    %459 = arith.addf %457, %458 : vector<2x128xf32>
    %460 = vector.broadcast %5 : vector<1x128xf32> to vector<2x128xf32>
    %461 = arith.addf %459, %460 : vector<2x128xf32>
    %462 = arith.negf %461 : vector<2x128xf32>
    %463 = math.exp %462 : vector<2x128xf32>
    %cst_156 = arith.constant 1.000000e+00 : f32
    %464 = vector.broadcast %cst_156 : f32 to vector<2x128xf32>
    %465 = arith.addf %464, %463 : vector<2x128xf32>
    %466 = arith.divf %464, %465 : vector<2x128xf32>
    %467 = vector.extract_strided_slice %466 {offsets = [0, 0], sizes = [2, 32], strides = [1, 1]} : vector<2x128xf32> to vector<2x32xf32>
    %468 = vector.extract_strided_slice %466 {offsets = [0, 32], sizes = [2, 32], strides = [1, 1]} : vector<2x128xf32> to vector<2x32xf32>
    %469 = vector.extract_strided_slice %466 {offsets = [0, 64], sizes = [2, 32], strides = [1, 1]} : vector<2x128xf32> to vector<2x32xf32>
    %cst_157 = arith.constant 2.000000e+00 : f32
    %470 = vector.broadcast %cst_157 : f32 to vector<2x32xf32>
    %471 = arith.mulf %470, %469 : vector<2x32xf32>
    %cst_158 = arith.constant 1.000000e+00 : f32
    %472 = vector.broadcast %cst_158 : f32 to vector<2x32xf32>
    %473 = arith.subf %471, %472 : vector<2x32xf32>
    %474 = vector.extract_strided_slice %466 {offsets = [0, 96], sizes = [2, 32], strides = [1, 1]} : vector<2x128xf32> to vector<2x32xf32>
    %475 = arith.mulf %468, %410 : vector<2x32xf32>
    %476 = arith.mulf %467, %473 : vector<2x32xf32>
    %477 = arith.addf %475, %476 : vector<2x32xf32>
    %cst_159 = arith.constant 2.000000e+00 : f32
    %478 = vector.broadcast %cst_159 : f32 to vector<2x32xf32>
    %479 = arith.mulf %478, %477 : vector<2x32xf32>
    %480 = arith.negf %479 : vector<2x32xf32>
    %481 = math.exp %480 : vector<2x32xf32>
    %cst_160 = arith.constant 1.000000e+00 : f32
    %482 = vector.broadcast %cst_160 : f32 to vector<2x32xf32>
    %483 = arith.addf %482, %481 : vector<2x32xf32>
    %484 = arith.divf %482, %483 : vector<2x32xf32>
    %cst_161 = arith.constant 2.000000e+00 : f32
    %485 = vector.broadcast %cst_161 : f32 to vector<2x32xf32>
    %486 = arith.mulf %485, %484 : vector<2x32xf32>
    %cst_162 = arith.constant 1.000000e+00 : f32
    %487 = vector.broadcast %cst_162 : f32 to vector<2x32xf32>
    %488 = arith.subf %486, %487 : vector<2x32xf32>
    %489 = arith.mulf %474, %488 : vector<2x32xf32>
    %c192 = arith.constant 192 : index
    %c0_163 = arith.constant 0 : index
    %490 = vector.load %arg9[%c192, %c0_163] : memref<256x8xf32, #tpu.memory_space<vmem>>, vector<32x8xf32>
    %cst_164 = arith.constant dense<0.000000e+00> : vector<2x8xf32>
    %491 = tpu.matmul %489, %490, %cst_164 {dimension_numbers = #tpu.dot_dimension_numbers<[1], [0], [0], [1], [0, 0, 1, 1], [], []>} : vector<2x32xf32>, vector<32x8xf32>, vector<2x8xf32> -> vector<2x8xf32>
    %492 = arith.addf %425, %491 : vector<2x8xf32>
    %493 = vector.extract_strided_slice %12 {offsets = [56, 0], sizes = [2, 128], strides = [1, 1]} : vector<64x128xf32> to vector<2x128xf32>
    %cst_165 = arith.constant dense<0.000000e+00> : vector<2x128xf32>
    %494 = tpu.matmul %456, %1, %cst_165 {dimension_numbers = #tpu.dot_dimension_numbers<[1], [0], [0], [1], [0, 0, 1, 1], [], []>} : vector<2x32xf32>, vector<32x128xf32>, vector<2x128xf32> -> vector<2x128xf32>
    %495 = arith.addf %493, %494 : vector<2x128xf32>
    %496 = arith.negf %495 : vector<2x128xf32>
    %497 = math.exp %496 : vector<2x128xf32>
    %cst_166 = arith.constant 1.000000e+00 : f32
    %498 = vector.broadcast %cst_166 : f32 to vector<2x128xf32>
    %499 = arith.addf %498, %497 : vector<2x128xf32>
    %500 = arith.divf %498, %499 : vector<2x128xf32>
    %501 = vector.extract_strided_slice %500 {offsets = [0, 0], sizes = [2, 32], strides = [1, 1]} : vector<2x128xf32> to vector<2x32xf32>
    %502 = vector.extract_strided_slice %500 {offsets = [0, 32], sizes = [2, 32], strides = [1, 1]} : vector<2x128xf32> to vector<2x32xf32>
    %503 = vector.extract_strided_slice %500 {offsets = [0, 64], sizes = [2, 32], strides = [1, 1]} : vector<2x128xf32> to vector<2x32xf32>
    %cst_167 = arith.constant 2.000000e+00 : f32
    %504 = vector.broadcast %cst_167 : f32 to vector<2x32xf32>
    %505 = arith.mulf %504, %503 : vector<2x32xf32>
    %cst_168 = arith.constant 1.000000e+00 : f32
    %506 = vector.broadcast %cst_168 : f32 to vector<2x32xf32>
    %507 = arith.subf %505, %506 : vector<2x32xf32>
    %508 = vector.extract_strided_slice %500 {offsets = [0, 96], sizes = [2, 32], strides = [1, 1]} : vector<2x128xf32> to vector<2x32xf32>
    %509 = arith.mulf %502, %444 : vector<2x32xf32>
    %510 = arith.mulf %501, %507 : vector<2x32xf32>
    %511 = arith.addf %509, %510 : vector<2x32xf32>
    %cst_169 = arith.constant 2.000000e+00 : f32
    %512 = vector.broadcast %cst_169 : f32 to vector<2x32xf32>
    %513 = arith.mulf %512, %511 : vector<2x32xf32>
    %514 = arith.negf %513 : vector<2x32xf32>
    %515 = math.exp %514 : vector<2x32xf32>
    %cst_170 = arith.constant 1.000000e+00 : f32
    %516 = vector.broadcast %cst_170 : f32 to vector<2x32xf32>
    %517 = arith.addf %516, %515 : vector<2x32xf32>
    %518 = arith.divf %516, %517 : vector<2x32xf32>
    %cst_171 = arith.constant 2.000000e+00 : f32
    %519 = vector.broadcast %cst_171 : f32 to vector<2x32xf32>
    %520 = arith.mulf %519, %518 : vector<2x32xf32>
    %cst_172 = arith.constant 1.000000e+00 : f32
    %521 = vector.broadcast %cst_172 : f32 to vector<2x32xf32>
    %522 = arith.subf %520, %521 : vector<2x32xf32>
    %523 = arith.mulf %508, %522 : vector<2x32xf32>
    %cst_173 = arith.constant dense<0.000000e+00> : vector<2x128xf32>
    %524 = tpu.matmul %523, %3, %cst_173 {dimension_numbers = #tpu.dot_dimension_numbers<[1], [0], [0], [1], [0, 0, 1, 1], [], []>} : vector<2x32xf32>, vector<32x128xf32>, vector<2x128xf32> -> vector<2x128xf32>
    %cst_174 = arith.constant dense<0.000000e+00> : vector<2x128xf32>
    %525 = tpu.matmul %489, %4, %cst_174 {dimension_numbers = #tpu.dot_dimension_numbers<[1], [0], [0], [1], [0, 0, 1, 1], [], []>} : vector<2x32xf32>, vector<32x128xf32>, vector<2x128xf32> -> vector<2x128xf32>
    %526 = arith.addf %524, %525 : vector<2x128xf32>
    %527 = vector.broadcast %5 : vector<1x128xf32> to vector<2x128xf32>
    %528 = arith.addf %526, %527 : vector<2x128xf32>
    %529 = arith.negf %528 : vector<2x128xf32>
    %530 = math.exp %529 : vector<2x128xf32>
    %cst_175 = arith.constant 1.000000e+00 : f32
    %531 = vector.broadcast %cst_175 : f32 to vector<2x128xf32>
    %532 = arith.addf %531, %530 : vector<2x128xf32>
    %533 = arith.divf %531, %532 : vector<2x128xf32>
    %534 = vector.extract_strided_slice %533 {offsets = [0, 0], sizes = [2, 32], strides = [1, 1]} : vector<2x128xf32> to vector<2x32xf32>
    %535 = vector.extract_strided_slice %533 {offsets = [0, 32], sizes = [2, 32], strides = [1, 1]} : vector<2x128xf32> to vector<2x32xf32>
    %536 = vector.extract_strided_slice %533 {offsets = [0, 64], sizes = [2, 32], strides = [1, 1]} : vector<2x128xf32> to vector<2x32xf32>
    %cst_176 = arith.constant 2.000000e+00 : f32
    %537 = vector.broadcast %cst_176 : f32 to vector<2x32xf32>
    %538 = arith.mulf %537, %536 : vector<2x32xf32>
    %cst_177 = arith.constant 1.000000e+00 : f32
    %539 = vector.broadcast %cst_177 : f32 to vector<2x32xf32>
    %540 = arith.subf %538, %539 : vector<2x32xf32>
    %541 = vector.extract_strided_slice %533 {offsets = [0, 96], sizes = [2, 32], strides = [1, 1]} : vector<2x128xf32> to vector<2x32xf32>
    %542 = arith.mulf %535, %477 : vector<2x32xf32>
    %543 = arith.mulf %534, %540 : vector<2x32xf32>
    %544 = arith.addf %542, %543 : vector<2x32xf32>
    %cst_178 = arith.constant 2.000000e+00 : f32
    %545 = vector.broadcast %cst_178 : f32 to vector<2x32xf32>
    %546 = arith.mulf %545, %544 : vector<2x32xf32>
    %547 = arith.negf %546 : vector<2x32xf32>
    %548 = math.exp %547 : vector<2x32xf32>
    %cst_179 = arith.constant 1.000000e+00 : f32
    %549 = vector.broadcast %cst_179 : f32 to vector<2x32xf32>
    %550 = arith.addf %549, %548 : vector<2x32xf32>
    %551 = arith.divf %549, %550 : vector<2x32xf32>
    %cst_180 = arith.constant 2.000000e+00 : f32
    %552 = vector.broadcast %cst_180 : f32 to vector<2x32xf32>
    %553 = arith.mulf %552, %551 : vector<2x32xf32>
    %cst_181 = arith.constant 1.000000e+00 : f32
    %554 = vector.broadcast %cst_181 : f32 to vector<2x32xf32>
    %555 = arith.subf %553, %554 : vector<2x32xf32>
    %556 = arith.mulf %541, %555 : vector<2x32xf32>
    %c224 = arith.constant 224 : index
    %c0_182 = arith.constant 0 : index
    %557 = vector.load %arg9[%c224, %c0_182] : memref<256x8xf32, #tpu.memory_space<vmem>>, vector<32x8xf32>
    %cst_183 = arith.constant dense<0.000000e+00> : vector<2x8xf32>
    %558 = tpu.matmul %556, %557, %cst_183 {dimension_numbers = #tpu.dot_dimension_numbers<[1], [0], [0], [1], [0, 0, 1, 1], [], []>} : vector<2x32xf32>, vector<32x8xf32>, vector<2x8xf32> -> vector<2x8xf32>
    %559 = arith.addf %492, %558 : vector<2x8xf32>
    %c0_184 = arith.constant 0 : index
    %c0_185 = arith.constant 0 : index
    %c0_186 = arith.constant 0 : index
    %560 = vector.load %arg14[%c0_184, %c0_185, %c0_186] : memref<2x2x32xf32, #tpu.memory_space<vmem>>, vector<1x2x32xf32>
    %561 = vector.shape_cast %560 : vector<1x2x32xf32> to vector<2x32xf32>
    %562 = vector.shape_cast %523 : vector<2x32xf32> to vector<1x2x32xf32>
    tpu.vector_store %arg14[%c0_184, %c0_185, %c0_186], %562 {strides = array<i32>} : memref<2x2x32xf32, #tpu.memory_space<vmem>>, vector<1x2x32xf32>,
    %c1_187 = arith.constant 1 : index
    %c0_188 = arith.constant 0 : index
    %c0_189 = arith.constant 0 : index
    %563 = vector.load %arg14[%c1_187, %c0_188, %c0_189] : memref<2x2x32xf32, #tpu.memory_space<vmem>>, vector<1x2x32xf32>
    %564 = vector.shape_cast %563 : vector<1x2x32xf32> to vector<2x32xf32>
    %565 = vector.shape_cast %556 : vector<2x32xf32> to vector<1x2x32xf32>
    tpu.vector_store %arg14[%c1_187, %c0_188, %c0_189], %565 {strides = array<i32>} : memref<2x2x32xf32, #tpu.memory_space<vmem>>, vector<1x2x32xf32>,
    %c0_190 = arith.constant 0 : index
    %c0_191 = arith.constant 0 : index
    %c0_192 = arith.constant 0 : index
    %566 = vector.load %arg15[%c0_190, %c0_191, %c0_192] : memref<2x2x32xf32, #tpu.memory_space<vmem>>, vector<1x2x32xf32>
    %567 = vector.shape_cast %566 : vector<1x2x32xf32> to vector<2x32xf32>
    %568 = vector.shape_cast %511 : vector<2x32xf32> to vector<1x2x32xf32>
    tpu.vector_store %arg15[%c0_190, %c0_191, %c0_192], %568 {strides = array<i32>} : memref<2x2x32xf32, #tpu.memory_space<vmem>>, vector<1x2x32xf32>,
    %c1_193 = arith.constant 1 : index
    %c0_194 = arith.constant 0 : index
    %c0_195 = arith.constant 0 : index
    %569 = vector.load %arg15[%c1_193, %c0_194, %c0_195] : memref<2x2x32xf32, #tpu.memory_space<vmem>>, vector<1x2x32xf32>
    %570 = vector.shape_cast %569 : vector<1x2x32xf32> to vector<2x32xf32>
    %571 = vector.shape_cast %544 : vector<2x32xf32> to vector<1x2x32xf32>
    tpu.vector_store %arg15[%c1_193, %c0_194, %c0_195], %571 {strides = array<i32>} : memref<2x2x32xf32, #tpu.memory_space<vmem>>, vector<1x2x32xf32>,
    %cst_196 = arith.constant 0.000000e+00 : f32
    %572 = vector.broadcast %cst_196 : f32 to vector<2x8xf32>
    %573 = arith.maximumf %559, %572 : vector<2x8xf32>
    %cst_197 = arith.constant dense<0.000000e+00> : vector<2x1xf32>
    %574 = tpu.matmul %573, %7, %cst_197 {dimension_numbers = #tpu.dot_dimension_numbers<[1], [0], [0], [1], [0, 0, 1, 1], [], []>} : vector<2x8xf32>, vector<8x1xf32>, vector<2x1xf32> -> vector<2x1xf32>
    %575 = vector.broadcast %8 : vector<1x1xf32> to vector<2x1xf32>
    %576 = arith.addf %574, %575 : vector<2x1xf32>
    %577 = arith.negf %576 : vector<2x1xf32>
    %578 = math.exp %577 : vector<2x1xf32>
    %cst_198 = arith.constant 1.000000e+00 : f32
    %579 = vector.broadcast %cst_198 : f32 to vector<2x1xf32>
    %580 = arith.addf %579, %578 : vector<2x1xf32>
    %581 = arith.divf %579, %580 : vector<2x1xf32>
    %c0_199 = arith.constant 0 : index
    %c0_200 = arith.constant 0 : index
    %582 = vector.load %arg13[%c0_199, %c0_200] : memref<2x1xf32, #tpu.memory_space<vmem>>, vector<2x1xf32>
    tpu.vector_store %arg13[%c0_199, %c0_200], %581 {strides = array<i32>} : memref<2x1xf32, #tpu.memory_space<vmem>>, vector<2x1xf32>,
    return
  }
}

</mosaic_0001>

<bundles_post_ra>
// kernel: lstm_forward.1
= control target key start
LH: loop header
LB: loop body
LE: loop exit
PB: predicated region body
PF: predicated region fallthrough
CT: control target
= control target key end

     0   :  { %s5068_s0 = inlined_call_operand.vmem [shape: f32[64,4], index: 0, kind: input, shape index: {}]   ;;  %s5069_s1 = inlined_call_operand.vmem [shape: f32[2,2,32], index: 1, kind: input, shape index: {}]   ;;  %s5070_s2 = inlined_call_operand.vmem [shape: f32[2,2,32], index: 2, kind: input, shape index: {}]   ;;  %s5071_s3 = inlined_call_operand.vmem [shape: f32[4,128], index: 3, kind: input, shape index: {}]   ;;  %s5072_s4 = inlined_call_operand.vmem [shape: f32[32,128], index: 4, kind: input, shape index: {}]   ;;  %s5073_s5 = inlined_call_operand.vmem [shape: f32[1,128], index: 5, kind: input, shape index: {}]   ;;  %s5074_s6 = inlined_call_operand.vmem [shape: f32[32,128], index: 6, kind: input, shape index: {}]   ;;  %s5075_s7 = inlined_call_operand.vmem [shape: f32[32,128], index: 7, kind: input, shape index: {}]   ;;  %s5076_s8 = inlined_call_operand.vmem [shape: f32[1,128], index: 8, kind: input, shape index: {}]   ;;  %s5077_s9 = inlined_call_operand.vmem [shape: f32[256,8], index: 9, kind: input, shape index: {}]   ;;  %s5078_s10 = inlined_call_operand.vmem [shape: f32[1,8], index: 10, kind: input, shape index: {}]   ;;  %s5079_s11 = inlined_call_operand.vmem [shape: f32[8,1], index: 11, kind: input, shape index: {}]   ;;  %s5080_s12 = inlined_call_operand.<no memory space> [shape: f32[1,1], index: 12, kind: input, shape index: {}]   ;;  %s5081_s13 = inlined_call_operand.vmem [shape: f32[2,1], index: 13, kind: output, shape index: {0}]   ;;  %s5082_s14 = inlined_call_operand.hbm [shape: f32[2,2,32], index: 14, kind: output, shape index: {1}]   ;;  %s5083_s15 = inlined_call_operand.hbm [shape: f32[2,2,32], index: 15, kind: output, shape index: {2}]  }
   0x1   :  { %v21_v0 = vstv %s5080_s12 }
   0x2   :  { %22 = vst [vmem:[#allocation2] sm:$0x1] %v21_v0 }
   0x3   :  { %23 = vsyncpa [#allocation4], 0  ;;  %v52_v1 = vld [vmem:[%s5072_s4] sm:$0xff]  ;;  %v53_v2 = vld [vmem:[%s5072_s4 + $0x8] sm:$0xff]  ;;  %vm108_vm0 = vcmask 1043456   ;;  %v4350_v4 = vmov 0.0|0.0  }
   0x4   :  { %v51_v3 = vld [vmem:[%s5071_s3] sm:$0xf]  ;;  %3952 = vmatprep.subr.bf16.mxu1 %v4350_v4  ;;  %v4452_v5 = vpack.c.bf16 %v53_v2, %v52_v1  ;;  %vm83_vm1 = vcmask 31744   ;;  %v70_v7 = vld [vmem:[%s5068_s0 + $0x8] sm:$0xff]  ;;  %v54_v8 = vld [vmem:[%s5072_s4 + $0x10] sm:$0xff] }
   0x5   :  { %3581 = vmatprep.subr.msk.mxu0 %vm108_vm0, %v51_v3  ;;  %v69_v6 = vld [vmem:[%s5068_s0] sm:$0xff]  ;;  %v55_v9 = vld [vmem:[%s5072_s4 + $0x18] sm:$0xff] }
   0x6   :  { %3582 = vmatpush3.msk.msra.mxu0 %vm108_vm0, %v51_v3  ;;  %3583 = vmatprep.mubr.msk.f32.mxu0 %vm83_vm1, %v69_v6 }
   0x7   :  { %24 = vsyncpa [#allocation6], 0  ;;  %3954 = vmatpush3.bf16.msra.mxu1 %v4452_v5  ;;  %3584 = vmatmul.mubr.msk.f32.vlgmr.msra.gmra.mrb[0].mxu0 %vm83_vm1, %v70_v7  ;;  %v4469_v10 = vpack.c.bf16 %v55_v9, %v54_v8  ;;  %vm4351_vm2 = vmmov 0   ;;  %v4352_v11 = vmov 0.0   ;;  %v217_v12 = vld [vmem:[%s5069_s1] sm:$0x3] }
   0x8   :  { %3955 = vmatprep.subr.bf16.mxu1 %v4350_v4  ;;  %3603 = vmatprep.mubr.msk.f32.mxu1 %vm4351_vm2, %v4352_v11  ;;  %vm230_vm3 = vcmask 261120   ;;  %v4488_v14 = vld [vmem:[%s5073_s5] ss:$0 sm:$0xff]  ;;  %s4353_s20 = smov 64   ;;  %s4354_s23 = smov 32   ;;  %v58_v38 = vld [vmem:[%s5074_s6 + $0x8] sm:$0xff] }
   0x9   :  { %3964 = vmatprep.subr.bf16.mxu0 %v4350_v4  ;;  %v218_v26 = vld [vmem:[%s5070_s2] sm:$0x3]  ;;  %v71_v39 = vld [vmem:[%s5068_s0 + $0x10] sm:$0xff]  ;;  %v72_v41 = vld [vmem:[%s5068_s0 + $0x18] sm:$0xff]  ;;  %vm3156_vm4 = vcmask 254976   ;;  %s4355_s22 = smov 96  }
   0xa   :  { %v57_v37 = vld [vmem:[%s5074_s6] sm:$0xff]  ;;  %3586 = vmatprep.mubr.msk.f32.mxu0 %vm83_vm1, %v71_v39  ;;  %v62_v44 = vld [vmem:[%s5075_s7 + $0x8] sm:$0xff]  ;;  %v59_v45 = vld [vmem:[%s5074_s6 + $0x10] sm:$0xff]  ;;  %vm3179_vm5 = vcmask 64512   ;;  %s4356_s12 = smov [#allocation3]   ;;  %s4357_s27 = smov [#allocation5]  }
   0xb   :  { %3957 = vmatpush3.bf16.msra.mxu1 %v4469_v10  ;;  %v4509_v40 = vpack.c.bf16 %v58_v38, %v57_v37  ;;  %v73_v42 = vld [vmem:[%s5068_s0 + $0x20] sm:$0xff]  ;;  %3587 = vmatmul.mubr.msk.f32.gmra.mrb[2].mxu0 %vm83_vm1, %v72_v41  ;;  %v74_v46 = vld [vmem:[%s5068_s0 + $0x28] sm:$0xff]  ;;  %v60_v48 = vld [vmem:[%s5074_s6 + $0x18] sm:$0xff]  ;;  %s3268_s26 = sshll.u32 %s4356_s12, 4  ;;  %s3280_s28 = sshll.u32 %s4357_s27, 4  ;;  %s3269_s26 = int_to_ptr.vmem [resolvable:$true] %s3268_s26  ;;  %s3281_s28 = int_to_ptr.vmem [resolvable:$true] %s3280_s28 }
   0xc   :  { %3958 = vmatprep.subr.bf16.mxu1 %v4350_v4  ;;  %v61_v43 = vld [vmem:[%s5075_s7] sm:$0xff]  ;;  %3589 = vmatprep.mubr.msk.f32.mxu0 %vm83_vm1, %v73_v42  ;;  %v4539_v49 = vpack.c.bf16 %v60_v48, %v59_v45  ;;  %v75_v50 = vld [vmem:[%s5068_s0 + $0x30] sm:$0xff]  ;;  %v64_v52 = vld [vmem:[%s5075_s7 + $0x18] sm:$0xff]  ;;  %p4307_p1 = scmp.lt.s32.totalorder %s3269_s26, %s3269_s26 }
   0xd   :  { %3966 = vmatpush3.bf16.msra.mxu0 %v4509_v40  ;;  %v4533_v47 = vpack.c.bf16 %v62_v44, %v61_v43  ;;  %v63_v51 = vld [vmem:[%s5075_s7 + $0x10] sm:$0xff]  ;;  %v76_v56 = vld [vmem:[%s5068_s0 + $0x38] sm:$0xff]  ;;  %v3307_v58 = vld [vmem:[%s5069_s1 + $0x2] sm:$0x3] }
   0xe   :  { %3604 = vmatmul.mubr.msk.f32.vlgmr.msra.gmra.mrb[0].mxu1 %vm230_vm3, %v217_v12  ;;  %3967 = vmatprep.subr.bf16.mxu0 %v4350_v4  ;;  %v4551_v53 = vpack.c.bf16 %v64_v52, %v63_v51  ;;  %v4603_v8 = vld [vmem:[%s5076_s8] ss:$0 sm:$0xff] }
   0xf   :  { %3614 = vmatprep.mubr.msk.f32.mxu1 %vm4351_vm2, %v4352_v11  ;;  %3960 = vmatpush3.bf16.msra.mxu1 %v4533_v47 }
  0x10   :  { %3590 = vmatmul.mubr.msk.f32.gmra.mrb[4].mxu0 %vm83_vm1, %v74_v46  ;;  %3961 = vmatprep.subr.bf16.mxu1 %v4350_v4 }
  0x11   :  { %3969 = vmatpush3.bf16.msra.mxu0 %v4539_v49  ;;  %3592 = vmatprep.mubr.msk.f32.mxu0 %vm83_vm1, %v75_v50 }
  0x12   :  { %3976 = vmatprep.subr.bf16.mxu0 %v4350_v4 }
  0x13   :  { %3963 = vmatpush3.bf16.msra.mxu1 %v4551_v53 }
  0x14   :  { %3593 = vmatmul.mubr.msk.f32.gmra.mrb[6].mxu0 %vm83_vm1, %v76_v56  ;;  %3970 = vmatprep.subr.bf16.mxu1 %v4350_v4 }
  0x15   :  { %3625 = vmatprep.mubr.msk.f32.mxu0 %vm4351_vm2, %v4352_v11 }
  0x16   :  { %3615 = vmatmul.mubr.msk.f32.vlgmr.msra.gmra.mrb[2].mxu1 %vm230_vm3, %v3307_v58  ;;  %v534_v58 = vld [vmem:[%s5077_s9] sm:$0xff] }
  0x17   :  { %3636 = vmatprep.mubr.msk.f32.mxu1 %vm4351_vm2, %v4352_v11 }
  0xda   :  { %v4483_v13 = vpop.f32.mrb[0].mxu0 }
  0xdb   :  { %v178_v15 = vpop.f32.mrb[1].mxu0 }
  0xdc   :  { %v179_v16 = vadd.f32 %v4488_v14, %v178_v15 }
  0xde   :  { %v4574_v61 = vpop.f32.mrb[2].mxu0 }
  0xdf   :  { %v4576_v62 = vpop.f32.mrb[3].mxu0 }
  0xe1   :  { %v300_v17 = vpop.f32.mrb[0].mxu1 }
  0xe2   :  { %v304_v18 = vadd.f32 %v300_v17, %v179_v16  ;;  %v3605_v19 = vpop.f32.mrb[1].mxu1 }
  0xe3   :  { %v4578_v63 = vpop.f32.mrb[4].mxu0 }
  0xe4   :  { %v3311_v20 = vmul.f32 -1.442695, %v304_v18  ;;  %v4580_v0 = vpop.f32.mrb[5].mxu0  ;;  %v184_v18 = vadd.f32 %v4483_v13, %v4488_v14  ;;  %v3308_v13 = vld [vmem:[%s5070_s2 + $0x2] sm:$0x3] }
  0xe6   :  { %4168 = vpow2.f32 %v3311_v20 }
  0xe7   :  { %v4582_v1 = vpop.f32.mrb[6].mxu0 }
  0xe8   :  { %v4584_v2 = vpop.f32.mrb[7].mxu0 }
  0xe9   :  { %v411_v3 = vpop.f32.mrb[2].mxu1 }
  0xea   :  { %v3616_v6 = vpop.f32.mrb[3].mxu1 }
  0xeb   :  { %v537_v6 = vld [vmem:[%s5077_s9 + $0x18] sm:$0xff] }
  0xf0   :  { %v4169_v21 = vpop.eup %4168 }
  0xf1   :  { %v308_v22 = vadd.f32 1.0, %v4169_v21 }
  0xf3   :  { %4170 = vrcp.f32 %v308_v22 }
  0xfd   :  { %v4171_v23 = vpop.eup %4170 }
  0xfe   :  { %v311_v24 = vmul.f32 2.0, %v4171_v23 }
 0x100   :  { %v3312_v25 = vadd.f32 -1.0, %v311_v24 }
 0x102   :  { %319 = vrot.lane.b32.xlu0 %v3312_v25, %s4353_s20 }
 0x106   :  { %314 = vrot.lane.b32.xlu0 %v218_v26, %s4354_s23 }
 0x174   :  { %v320_v27 = vpop.permute.xlu0 %319 }
 0x175   :  { %v322_v28 = vmul.f32 %v4171_v23, %v320_v27 }
 0x177   :  { %324 = vrot.lane.b32.xlu1 %v322_v28, %s4354_s23 }
 0x178   :  { %v315_v29 = vpop.permute.xlu0 %314 }
 0x179   :  { %v317_v30 = vmul.f32 %v4171_v23, %v315_v29 }
 0x1e9   :  { %v325_v31 = vpop.permute.xlu1 %324 }
 0x1ea   :  { %v4497_v32 = vadd.f32 %v325_v31, %v317_v30 }
 0x1ec   :  { %v3313_v33 = vmul.f32 -2.0, %v4497_v32 }
 0x1ee   :  { %v330_v34 = vmul.f32 1.442695, %v3313_v33 }
 0x1f0   :  { %4172 = vpow2.f32 %v330_v34 }
 0x1fa   :  { %v4173_v35 = vpop.eup %4172 }
 0x1fb   :  { %v332_v36 = vadd.f32 1.0, %v4173_v35 }
 0x1fd   :  { %4174 = vrcp.f32 %v332_v36 }
 0x207   :  { %v4175_v54 = vpop.eup %4174 }
 0x208   :  { %v335_v55 = vmul.f32 2.0, %v4175_v54 }
 0x20a   :  { %v3314_v57 = vadd.f32 -1.0, %v335_v55 }
 0x20c   :  { %338 = vrot.lane.b32.xlu1 %v3314_v57, %s4353_s20 }
 0x27e   :  { %v339_v59 = vpop.permute.xlu1 %338 }
 0x27f   :  { %v341_v60 = vmul.f32 %v4171_v23, %v339_v59  ;;  %v536_v59 = vld [vmem:[%s5077_s9 + $0x10] sm:$0xff] }
 0x281   :  { %416 = vrot.lane.b32.xlu0 %v341_v60, %s4354_s23 }
 0x2f3   :  { %v417_v7 = vpop.permute.xlu0 %416 }
 0x2f4   :  { %3626 = vmatmul.mubr.msk.f32.vlgmr.msra.gmra.mrb[8].mxu0 %vm230_vm3, %v417_v7 }
 0x2f5   :  { %3978 = vmatpush3.bf16.msra.mxu0 %v4452_v5  ;;  %3647 = vmatprep.mubr.msk.f32.mxu0 %vm4351_vm2, %v4352_v11 }
 0x2f6   :  { %3979 = vmatprep.subr.bf16.mxu0 %v4350_v4 }
 0x2f9   :  { %3981 = vmatpush3.bf16.msra.mxu0 %v4469_v10 }
 0x2fa   :  { %3988 = vmatprep.subr.bf16.mxu0 %v4350_v4 }
 0x2fc   :  { %3648 = vmatmul.mubr.msk.f32.vlgmr.msra.gmra.mrb[10].mxu0 %vm230_vm3, %v417_v7 }
 0x2fd   :  { %3990 = vmatpush3.bf16.msra.mxu0 %v4509_v40  ;;  %3669 = vmatprep.mubr.msk.f32.mxu0 %vm4351_vm2, %v4352_v11 }
 0x2fe   :  { %3991 = vmatprep.subr.bf16.mxu0 %v4350_v4 }
 0x301   :  { %3993 = vmatpush3.bf16.msra.mxu0 %v4539_v49 }
 0x302   :  { %4000 = vmatprep.subr.bf16.mxu0 %v4350_v4 }
 0x3c7   :  { %v486_v9 = vpop.f32.mrb[8].mxu0 }
 0x3c8   :  { %v487_v12 = vadd.f32 %v486_v9, %v411_v3  ;;  %v3627_v15 = vpop.f32.mrb[9].mxu0  ;;  %v3974_v9 = vpack.c.bf16 %v537_v6, %v536_v59 }
 0x3ca   :  { %v496_v16 = vadd.f32 %v4603_v8, %v487_v12 }
 0x3cc   :  { %v3318_v17 = vmul.f32 -1.442695, %v496_v16 }
 0x3ce   :  { %4176 = vpow2.f32 %v3318_v17 }
 0x3cf   :  { %v680_v19 = vpop.f32.mrb[10].mxu0 }
 0x3d0   :  { %v684_v20 = vadd.f32 %v680_v19, %v184_v18  ;;  %v3649_v21 = vpop.f32.mrb[11].mxu0 }
 0x3d2   :  { %v3324_v22 = vmul.f32 -1.442695, %v684_v20 }
 0x3d4   :  { %4178 = vpow2.f32 %v3324_v22 }
 0x3d8   :  { %v4177_v23 = vpop.eup %4176 }
 0x3d9   :  { %v500_v24 = vadd.f32 1.0, %v4177_v23 }
 0x3db   :  { %4180 = vrcp.f32 %v500_v24 }
 0x3de   :  { %v4179_v25 = vpop.eup %4178 }
 0x3df   :  { %v688_v26 = vadd.f32 1.0, %v4179_v25 }
 0x3e1   :  { %4182 = vrcp.f32 %v688_v26 }
 0x3e5   :  { %v4181_v27 = vpop.eup %4180 }
 0x3e6   :  { %v503_v28 = vmul.f32 2.0, %v4181_v27 }
 0x3e8   :  { %v3319_v29 = vadd.f32 -1.0, %v503_v28 }
 0x3ea   :  { %511 = vrot.lane.b32.xlu1 %v3319_v29, %s4353_s20  ;;  %v189_v29 = vadd.f32 %v4488_v14, %v4576_v62 }
 0x3eb   :  { %v4183_v30 = vpop.eup %4182 }
 0x3ec   :  { %v691_v31 = vmul.f32 2.0, %v4183_v30  ;;  %v693_v45 = vmul.f32 %v4183_v30, %v4497_v32  ;;  %v535_v32 = vld [vmem:[%s5077_s9 + $0x8] sm:$0xff] }
 0x3ed   :  { %v3971_v3 = vpack.c.bf16 %v535_v32, %v534_v58 }
 0x3ee   :  { %506 = vrot.lane.b32.xlu1 %v3308_v13, %s4354_s23  ;;  %v3325_v33 = vadd.f32 -1.0, %v691_v31 }
 0x3ef   :  { %3972 = vmatpush3.bf16.msra.mxu1 %v3971_v3 }
 0x3f0   :  { %695 = vrot.lane.b32.xlu0 %v3325_v33, %s4353_s20  ;;  %3973 = vmatprep.subr.bf16.mxu1 %v4350_v4 }
 0x3f3   :  { %3975 = vmatpush3.bf16.msra.mxu1 %v3974_v9 }
 0x3f4   :  { %3982 = vmatprep.subr.bf16.mxu1 %v4350_v4 }
 0x45c   :  { %v512_v34 = vpop.permute.xlu1 %511 }
 0x45d   :  { %v514_v35 = vmul.f32 %v4181_v27, %v512_v34 }
 0x45f   :  { %516 = vrot.lane.b32.xlu0 %v514_v35, %s4354_s23 }
 0x460   :  { %v507_v38 = vpop.permute.xlu1 %506 }
 0x461   :  { %v509_v39 = vmul.f32 %v4181_v27, %v507_v38 }
 0x462   :  { %v696_v36 = vpop.permute.xlu0 %695 }
 0x463   :  { %v698_v37 = vmul.f32 %v4183_v30, %v696_v36 }
 0x465   :  { %700 = vrot.lane.b32.xlu1 %v698_v37, %s4354_s23 }
 0x4d1   :  { %v517_v41 = vpop.permute.xlu0 %516 }
 0x4d2   :  { %v4616_v42 = vadd.f32 %v517_v41, %v509_v39 }
 0x4d4   :  { %v3320_v43 = vmul.f32 -2.0, %v4616_v42 }
 0x4d6   :  { %v522_v44 = vmul.f32 1.442695, %v3320_v43 }
 0x4d7   :  { %v701_v46 = vpop.permute.xlu1 %700 }
 0x4d8   :  { %4184 = vpow2.f32 %v522_v44  ;;  %v4620_v48 = vadd.f32 %v701_v46, %v693_v45 }
 0x4da   :  { %v3326_v50 = vmul.f32 -2.0, %v4620_v48 }
 0x4dc   :  { %v706_v51 = vmul.f32 1.442695, %v3326_v50 }
 0x4de   :  { %4186 = vpow2.f32 %v706_v51 }
 0x4e2   :  { %v4185_v52 = vpop.eup %4184 }
 0x4e3   :  { %v524_v54 = vadd.f32 1.0, %v4185_v52 }
 0x4e5   :  { %4188 = vrcp.f32 %v524_v54 }
 0x4e8   :  { %v4187_v55 = vpop.eup %4186 }
 0x4e9   :  { %v708_v56 = vadd.f32 1.0, %v4187_v55 }
 0x4eb   :  { %4190 = vrcp.f32 %v708_v56 }
 0x4ef   :  { %v4189_v57 = vpop.eup %4188 }
 0x4f0   :  { %v527_v60 = vmul.f32 2.0, %v4189_v57 }
 0x4f2   :  { %v3321_v7 = vadd.f32 -1.0, %v527_v60 }
 0x4f4   :  { %530 = vrot.lane.b32.xlu0 %v3321_v7, %s4353_s20 }
 0x4f5   :  { %v4191_v12 = vpop.eup %4190 }
 0x4f6   :  { %v711_v15 = vmul.f32 2.0, %v4191_v12 }
 0x4f8   :  { %v3327_v16 = vadd.f32 -1.0, %v711_v15  ;;  %v897_v15 = vld [vmem:[%s5077_s9 + $0x20] sm:$0xff] }
 0x4fa   :  { %714 = vrot.lane.b32.xlu1 %v3327_v16, %s4353_s20  ;;  %v899_v16 = vld [vmem:[%s5077_s9 + $0x30] sm:$0xff] }
 0x566   :  { %v531_v17 = vpop.permute.xlu0 %530 }
 0x567   :  { %v533_v18 = vmul.f32 %v4181_v27, %v531_v17 }
 0x569   :  { %539 = vrot.lane.b32.xlu0 %v533_v18, %s4354_s23  ;;  %v900_v18 = vld [vmem:[%s5077_s9 + $0x38] sm:$0xff] }
 0x56c   :  { %v715_v19 = vpop.permute.xlu1 %714 }
 0x56d   :  { %v717_v20 = vmul.f32 %v4183_v30, %v715_v19 }
 0x56f   :  { %789 = vrot.lane.b32.xlu1 %v717_v20, %s4354_s23 }
 0x5db   :  { %v540_v21 = vpop.permute.xlu0 %539 }
 0x5dc   :  { %3637 = vmatmul.mubr.msk.f32.vlgmr.msra.gmra.mrb[4].mxu1 %vm230_vm3, %v540_v21 }
 0x5dd   :  { %3984 = vmatpush3.bf16.msra.mxu1 %v4533_v47  ;;  %3658 = vmatprep.mubr.msk.f32.mxu1 %vm4351_vm2, %v4352_v11 }
 0x5de   :  { %3985 = vmatprep.subr.bf16.mxu1 %v4350_v4 }
 0x5e1   :  { %v790_v22 = vpop.permute.xlu1 %789  ;;  %3987 = vmatpush3.bf16.msra.mxu1 %v4551_v53 }
 0x5e2   :  { %3670 = vmatmul.mubr.msk.f32.vlgmr.msra.gmra.mrb[12].mxu0 %vm230_vm3, %v790_v22  ;;  %3994 = vmatprep.subr.bf16.mxu1 %v4350_v4 }
 0x5e3   :  { %4002 = vmatpush3.bf16.msra.mxu0 %v4452_v5  ;;  %3691 = vmatprep.mubr.msk.f32.mxu0 %vm4351_vm2, %v4352_v11 }
 0x5e4   :  { %3659 = vmatmul.mubr.msk.f32.vlgmr.msra.gmra.mrb[6].mxu1 %vm230_vm3, %v540_v21  ;;  %4003 = vmatprep.subr.bf16.mxu0 %v4350_v4  ;;  %v3998_v21 = vpack.c.bf16 %v900_v18, %v899_v16 }
 0x5e5   :  { %3680 = vmatprep.mubr.msk.f32.mxu1 %vm4351_vm2, %v4352_v11 }
 0x5e7   :  { %4005 = vmatpush3.bf16.msra.mxu0 %v4469_v10 }
 0x5e8   :  { %4012 = vmatprep.subr.bf16.mxu0 %v4350_v4 }
 0x5ea   :  { %3692 = vmatmul.mubr.msk.f32.vlgmr.msra.gmra.mrb[14].mxu0 %vm230_vm3, %v790_v22 }
 0x5eb   :  { %4014 = vmatpush3.bf16.msra.mxu0 %v4509_v40  ;;  %3713 = vmatprep.mubr.msk.f32.mxu0 %vm4351_vm2, %v4352_v11 }
 0x5ec   :  { %4015 = vmatprep.subr.bf16.mxu0 %v4350_v4 }
 0x5ef   :  { %4017 = vmatpush3.bf16.msra.mxu0 %v4539_v49 }
 0x5f0   :  { %4024 = vmatprep.subr.bf16.mxu0 %v4350_v4 }
 0x6b5   :  { %v859_v23 = vpop.f32.mrb[12].mxu0 }
 0x6b6   :  { %v3671_v24 = vpop.f32.mrb[13].mxu0 }
 0x6b7   :  { %v784_v25 = vpop.f32.mrb[6].mxu1 }
 0x6b8   :  { %v860_v26 = vadd.f32 %v859_v23, %v784_v25  ;;  %v3660_v27 = vpop.f32.mrb[7].mxu1 }
 0x6ba   :  { %v863_v28 = vadd.f32 %v4603_v8, %v860_v26 }
 0x6bc   :  { %v3330_v30 = vmul.f32 -1.442695, %v863_v28 }
 0x6bd   :  { %v1043_v13 = vpop.f32.mrb[14].mxu0 }
 0x6be   :  { %4192 = vpow2.f32 %v3330_v30  ;;  %v1047_v31 = vadd.f32 %v1043_v13, %v189_v29  ;;  %v3693_v33 = vpop.f32.mrb[15].mxu0 }
 0x6c0   :  { %v3336_v34 = vmul.f32 -1.442695, %v1047_v31 }
 0x6c2   :  { %4194 = vpow2.f32 %v3336_v34 }
 0x6c8   :  { %v4193_v35 = vpop.eup %4192 }
 0x6c9   :  { %v867_v36 = vadd.f32 1.0, %v4193_v35 }
 0x6cb   :  { %4196 = vrcp.f32 %v867_v36 }
 0x6cc   :  { %v4195_v37 = vpop.eup %4194 }
 0x6cd   :  { %v1051_v38 = vadd.f32 1.0, %v4195_v37  ;;  %v194_v37 = vadd.f32 %v4574_v61, %v4488_v14 }
 0x6cf   :  { %4198 = vrcp.f32 %v1051_v38 }
 0x6d5   :  { %v4197_v39 = vpop.eup %4196 }
 0x6d6   :  { %v870_v41 = vmul.f32 2.0, %v4197_v39  ;;  %v872_v54 = vmul.f32 %v4197_v39, %v4616_v42 }
 0x6d8   :  { %v3331_v43 = vadd.f32 -1.0, %v870_v41 }
 0x6d9   :  { %v4199_v44 = vpop.eup %4198 }
 0x6da   :  { %874 = vrot.lane.b32.xlu0 %v3331_v43, %s4353_s20  ;;  %v1054_v62 = vmul.f32 2.0, %v4199_v44  ;;  %v1056_v58 = vmul.f32 %v4199_v44, %v4620_v48  ;;  %v898_v48 = vld [vmem:[%s5077_s9 + $0x28] sm:$0xff] }
 0x6db   :  { %v3995_v17 = vpack.c.bf16 %v898_v48, %v897_v15 }
 0x6dc   :  { %v3337_v45 = vadd.f32 -1.0, %v1054_v62 }
 0x6dd   :  { %3996 = vmatpush3.bf16.msra.mxu1 %v3995_v17 }
 0x6de   :  { %1058 = vrot.lane.b32.xlu1 %v3337_v45, %s4353_s20  ;;  %3997 = vmatprep.subr.bf16.mxu1 %v4350_v4 }
 0x6e1   :  { %3999 = vmatpush3.bf16.msra.mxu1 %v3998_v21 }
 0x6e2   :  { %4006 = vmatprep.subr.bf16.mxu1 %v4350_v4 }
 0x74c   :  { %v875_v46 = vpop.permute.xlu0 %874 }
 0x74d   :  { %v877_v50 = vmul.f32 %v4197_v39, %v875_v46 }
 0x74f   :  { %879 = vrot.lane.b32.xlu0 %v877_v50, %s4354_s23 }
 0x750   :  { %v1059_v51 = vpop.permute.xlu1 %1058 }
 0x751   :  { %v1061_v52 = vmul.f32 %v4199_v44, %v1059_v51 }
 0x753   :  { %1063 = vrot.lane.b32.xlu1 %v1061_v52, %s4354_s23 }
 0x7c1   :  { %v880_v55 = vpop.permute.xlu0 %879 }
 0x7c2   :  { %v4673_v56 = vadd.f32 %v880_v55, %v872_v54 }
 0x7c4   :  { %v3332_v57 = vmul.f32 -2.0, %v4673_v56 }
 0x7c5   :  { %v1064_v32 = vpop.permute.xlu1 %1063 }
 0x7c6   :  { %v885_v59 = vmul.f32 1.442695, %v3332_v57  ;;  %v4677_v60 = vadd.f32 %v1064_v32, %v1056_v58 }
 0x7c8   :  { %4200 = vpow2.f32 %v885_v59  ;;  %v3338_v3 = vmul.f32 -2.0, %v4677_v60 }
 0x7ca   :  { %v1069_v6 = vmul.f32 1.442695, %v3338_v3 }
 0x7cc   :  { %4202 = vpow2.f32 %v1069_v6 }
 0x7d2   :  { %v4201_v7 = vpop.eup %4200 }
 0x7d3   :  { %v887_v9 = vadd.f32 1.0, %v4201_v7 }
 0x7d5   :  { %4204 = vrcp.f32 %v887_v9 }
 0x7d6   :  { %v4203_v42 = vpop.eup %4202 }
 0x7d7   :  { %v1071_v12 = vadd.f32 1.0, %v4203_v42 }
 0x7d9   :  { %4206 = vrcp.f32 %v1071_v12 }
 0x7df   :  { %v4205_v19 = vpop.eup %4204 }
 0x7e0   :  { %v890_v20 = vmul.f32 2.0, %v4205_v19 }
 0x7e2   :  { %v3333_v22 = vadd.f32 -1.0, %v890_v20 }
 0x7e3   :  { %v4207_v23 = vpop.eup %4206 }
 0x7e4   :  { %893 = vrot.lane.b32.xlu0 %v3333_v22, %s4353_s20  ;;  %v1074_v24 = vmul.f32 2.0, %v4207_v23  ;;  %v1261_v23 = vld [vmem:[%s5077_s9 + $0x48] sm:$0xff] }
 0x7e6   :  { %v3339_v25 = vadd.f32 -1.0, %v1074_v24  ;;  %v1262_v24 = vld [vmem:[%s5077_s9 + $0x50] sm:$0xff] }
 0x7e8   :  { %1077 = vrot.lane.b32.xlu1 %v3339_v25, %s4353_s20 }
 0x856   :  { %v894_v26 = vpop.permute.xlu0 %893 }
 0x857   :  { %v896_v27 = vmul.f32 %v4197_v39, %v894_v26  ;;  %v1263_v26 = vld [vmem:[%s5077_s9 + $0x58] sm:$0xff] }
 0x859   :  { %902 = vrot.lane.b32.xlu0 %v896_v27, %s4354_s23  ;;  %v4022_v27 = vpack.c.bf16 %v1263_v26, %v1262_v24 }
 0x85a   :  { %v1078_v28 = vpop.permute.xlu1 %1077 }
 0x85b   :  { %v1080_v29 = vmul.f32 %v4199_v44, %v1078_v28 }
 0x85d   :  { %1152 = vrot.lane.b32.xlu1 %v1080_v29, %s4354_s23 }
 0x8cb   :  { %v903_v30 = vpop.permute.xlu0 %902 }
 0x8cc   :  { %3681 = vmatmul.mubr.msk.f32.vlgmr.msra.gmra.mrb[4].mxu1 %vm230_vm3, %v903_v30 }
 0x8cd   :  { %4008 = vmatpush3.bf16.msra.mxu1 %v4533_v47  ;;  %3702 = vmatprep.mubr.msk.f32.mxu1 %vm4351_vm2, %v4352_v11 }
 0x8ce   :  { %4009 = vmatprep.subr.bf16.mxu1 %v4350_v4 }
 0x8cf   :  { %v1153_v13 = vpop.permute.xlu1 %1152 }
 0x8d0   :  { %3714 = vmatmul.mubr.msk.f32.vlgmr.msra.gmra.mrb[16].mxu0 %vm230_vm3, %v1153_v13 }
 0x8d1   :  { %4026 = vmatpush3.bf16.msra.mxu0 %v4452_v5  ;;  %4011 = vmatpush3.bf16.msra.mxu1 %v4551_v53 }
 0x8d2   :  { %4027 = vmatprep.subr.bf16.mxu0 %v4350_v4  ;;  %3735 = vmatprep.mubr.msk.f32.mxu0 %vm4351_vm2, %v4352_v11 }
 0x8d3   :  { %4018 = vmatprep.subr.bf16.mxu1 %v4350_v4 }
 0x8d4   :  { %3703 = vmatmul.mubr.msk.f32.vlgmr.msra.gmra.mrb[8].mxu1 %vm230_vm3, %v903_v30 }
 0x8d5   :  { %4029 = vmatpush3.bf16.msra.mxu0 %v4469_v10  ;;  %3724 = vmatprep.mubr.msk.f32.mxu1 %vm4351_vm2, %v4352_v11 }
 0x8d6   :  { %4036 = vmatprep.subr.bf16.mxu0 %v4350_v4 }
 0x8d8   :  { %3736 = vmatmul.mubr.msk.f32.vlgmr.msra.gmra.mrb[18].mxu0 %vm230_vm3, %v1153_v13 }
 0x8d9   :  { %4038 = vmatpush3.bf16.msra.mxu0 %v4509_v40  ;;  %3757 = vmatprep.mubr.msk.f32.mxu0 %vm4351_vm2, %v4352_v11 }
 0x8da   :  { %4039 = vmatprep.subr.bf16.mxu0 %v4350_v4 }
 0x8dd   :  { %4041 = vmatpush3.bf16.msra.mxu0 %v4539_v49 }
 0x8de   :  { %4048 = vmatprep.subr.bf16.mxu0 %v4350_v4 }
 0x9a3   :  { %v1222_v31 = vpop.f32.mrb[16].mxu0 }
 0x9a4   :  { %v3715_v33 = vpop.f32.mrb[17].mxu0 }
 0x9a7   :  { %v1147_v34 = vpop.f32.mrb[8].mxu1 }
 0x9a8   :  { %v1223_v35 = vadd.f32 %v1222_v31, %v1147_v34  ;;  %v3704_v36 = vpop.f32.mrb[9].mxu1 }
 0x9aa   :  { %v1226_v38 = vadd.f32 %v4603_v8, %v1223_v35 }
 0x9ab   :  { %v1406_v39 = vpop.f32.mrb[18].mxu0 }
 0x9ac   :  { %v3342_v41 = vmul.f32 -1.442695, %v1226_v38  ;;  %v1410_v43 = vadd.f32 %v1406_v39, %v194_v37  ;;  %v3737_v44 = vpop.f32.mrb[19].mxu0 }
 0x9ae   :  { %4208 = vpow2.f32 %v3342_v41  ;;  %v3348_v62 = vmul.f32 -1.442695, %v1410_v43 }
 0x9b0   :  { %4210 = vpow2.f32 %v3348_v62  ;;  %v199_v62 = vadd.f32 %v4488_v14, %v4580_v0 }
 0x9b8   :  { %v4209_v45 = vpop.eup %4208 }
 0x9b9   :  { %v1230_v46 = vadd.f32 1.0, %v4209_v45 }
 0x9ba   :  { %v4211_v50 = vpop.eup %4210 }
 0x9bb   :  { %4212 = vrcp.f32 %v1230_v46  ;;  %v1414_v51 = vadd.f32 1.0, %v4211_v50 }
 0x9bd   :  { %4214 = vrcp.f32 %v1414_v51 }
 0x9c5   :  { %v4213_v52 = vpop.eup %4212 }
 0x9c6   :  { %v1233_v54 = vmul.f32 2.0, %v4213_v52  ;;  %v1235_v7 = vmul.f32 %v4213_v52, %v4673_v56 }
 0x9c7   :  { %v4215_v55 = vpop.eup %4214 }
 0x9c8   :  { %v3343_v57 = vadd.f32 -1.0, %v1233_v54  ;;  %v1417_v61 = vmul.f32 2.0, %v4215_v55  ;;  %v1419_v12 = vmul.f32 %v4215_v55, %v4677_v60  ;;  %v1260_v60 = vld [vmem:[%s5077_s9 + $0x40] sm:$0xff] }
 0x9c9   :  { %v4019_v25 = vpack.c.bf16 %v1261_v23, %v1260_v60 }
 0x9ca   :  { %1237 = vrot.lane.b32.xlu0 %v3343_v57, %s4353_s20  ;;  %v3349_v58 = vadd.f32 -1.0, %v1417_v61 }
 0x9cb   :  { %4020 = vmatpush3.bf16.msra.mxu1 %v4019_v25 }
 0x9cc   :  { %1421 = vrot.lane.b32.xlu1 %v3349_v58, %s4353_s20  ;;  %4021 = vmatprep.subr.bf16.mxu1 %v4350_v4 }
 0x9cf   :  { %4023 = vmatpush3.bf16.msra.mxu1 %v4022_v27 }
 0x9d0   :  { %4030 = vmatprep.subr.bf16.mxu1 %v4350_v4 }
 0xa3c   :  { %v1238_v32 = vpop.permute.xlu0 %1237 }
 0xa3d   :  { %v1240_v59 = vmul.f32 %v4213_v52, %v1238_v32 }
 0xa3e   :  { %v1422_v3 = vpop.permute.xlu1 %1421 }
 0xa3f   :  { %v1424_v6 = vmul.f32 %v4215_v55, %v1422_v3  ;;  %1242 = vrot.lane.b32.xlu0 %v1240_v59, %s4354_s23 }
 0xa41   :  { %1426 = vrot.lane.b32.xlu1 %v1424_v6, %s4354_s23 }
 0xab1   :  { %v1243_v9 = vpop.permute.xlu0 %1242 }
 0xab2   :  { %v4730_v42 = vadd.f32 %v1243_v9, %v1235_v7 }
 0xab3   :  { %v1427_v15 = vpop.permute.xlu1 %1426 }
 0xab4   :  { %v3344_v48 = vmul.f32 -2.0, %v4730_v42  ;;  %v4734_v16 = vadd.f32 %v1427_v15, %v1419_v12 }
 0xab6   :  { %v1248_v17 = vmul.f32 1.442695, %v3344_v48  ;;  %v3350_v18 = vmul.f32 -2.0, %v4734_v16 }
 0xab8   :  { %4216 = vpow2.f32 %v1248_v17  ;;  %v1432_v19 = vmul.f32 1.442695, %v3350_v18 }
 0xaba   :  { %4218 = vpow2.f32 %v1432_v19 }
 0xac2   :  { %v4217_v20 = vpop.eup %4216 }
 0xac3   :  { %v1250_v21 = vadd.f32 1.0, %v4217_v20 }
 0xac4   :  { %v4219_v22 = vpop.eup %4218 }
 0xac5   :  { %4220 = vrcp.f32 %v1250_v21  ;;  %v1434_v56 = vadd.f32 1.0, %v4219_v22 }
 0xac7   :  { %4222 = vrcp.f32 %v1434_v56 }
 0xacf   :  { %v4221_v28 = vpop.eup %4220 }
 0xad0   :  { %v1253_v29 = vmul.f32 2.0, %v4221_v28 }
 0xad1   :  { %v4223_v30 = vpop.eup %4222 }
 0xad2   :  { %v3345_v13 = vadd.f32 -1.0, %v1253_v29  ;;  %v1437_v31 = vmul.f32 2.0, %v4223_v30  ;;  %v1624_v30 = vld [vmem:[%s5077_s9 + $0x68] sm:$0xff] }
 0xad4   :  { %1256 = vrot.lane.b32.xlu0 %v3345_v13, %s4353_s20  ;;  %v3351_v33 = vadd.f32 -1.0, %v1437_v31  ;;  %v1625_v13 = vld [vmem:[%s5077_s9 + $0x70] sm:$0xff] }
 0xad6   :  { %1440 = vrot.lane.b32.xlu1 %v3351_v33, %s4353_s20  ;;  %v1626_v33 = vld [vmem:[%s5077_s9 + $0x78] sm:$0xff] }
 0xb46   :  { %v1257_v34 = vpop.permute.xlu0 %1256 }
 0xb47   :  { %v1259_v35 = vmul.f32 %v4213_v52, %v1257_v34  ;;  %v4046_v34 = vpack.c.bf16 %v1626_v33, %v1625_v13 }
 0xb48   :  { %v1441_v36 = vpop.permute.xlu1 %1440 }
 0xb49   :  { %v1443_v37 = vmul.f32 %v4215_v55, %v1441_v36  ;;  %1265 = vrot.lane.b32.xlu0 %v1259_v35, %s4354_s23 }
 0xb4b   :  { %1515 = vrot.lane.b32.xlu1 %v1443_v37, %s4354_s23 }
 0xbbb   :  { %v1266_v38 = vpop.permute.xlu0 %1265 }
 0xbbc   :  { %3725 = vmatmul.mubr.msk.f32.vlgmr.msra.gmra.mrb[4].mxu1 %vm230_vm3, %v1266_v38 }
 0xbbd   :  { %4032 = vmatpush3.bf16.msra.mxu1 %v4533_v47  ;;  %v1516_v39 = vpop.permute.xlu1 %1515  ;;  %3746 = vmatprep.mubr.msk.f32.mxu1 %vm4351_vm2, %v4352_v11 }
 0xbbe   :  { %3758 = vmatmul.mubr.msk.f32.vlgmr.msra.gmra.mrb[20].mxu0 %vm230_vm3, %v1516_v39  ;;  %4033 = vmatprep.subr.bf16.mxu1 %v4350_v4 }
 0xbbf   :  { %4050 = vmatpush3.bf16.msra.mxu0 %v4452_v5  ;;  %3779 = vmatprep.mubr.msk.f32.mxu0 %vm4351_vm2, %v4352_v11 }
 0xbc0   :  { %4051 = vmatprep.subr.bf16.mxu0 %v4350_v4 }
 0xbc1   :  { %4035 = vmatpush3.bf16.msra.mxu1 %v4551_v53 }
 0xbc2   :  { %4042 = vmatprep.subr.bf16.mxu1 %v4350_v4 }
 0xbc3   :  { %4053 = vmatpush3.bf16.msra.mxu0 %v4469_v10 }
 0xbc4   :  { %3747 = vmatmul.mubr.msk.f32.vlgmr.msra.gmra.mrb[10].mxu1 %vm230_vm3, %v1266_v38  ;;  %4060 = vmatprep.subr.bf16.mxu0 %v4350_v4 }
 0xbc5   :  { %3768 = vmatprep.mubr.msk.f32.mxu1 %vm4351_vm2, %v4352_v11 }
 0xbc6   :  { %3780 = vmatmul.mubr.msk.f32.vlgmr.msra.gmra.mrb[22].mxu0 %vm230_vm3, %v1516_v39 }
 0xbc7   :  { %4062 = vmatpush3.bf16.msra.mxu0 %v4509_v40  ;;  %3801 = vmatprep.mubr.msk.f32.mxu0 %vm4351_vm2, %v4352_v11 }
 0xbc8   :  { %4063 = vmatprep.subr.bf16.mxu0 %v4350_v4 }
 0xbcb   :  { %4065 = vmatpush3.bf16.msra.mxu0 %v4539_v49 }
 0xbcc   :  { %4072 = vmatprep.subr.bf16.mxu0 %v4350_v4 }
 0xc91   :  { %v1585_v41 = vpop.f32.mrb[20].mxu0 }
 0xc92   :  { %v3759_v43 = vpop.f32.mrb[21].mxu0 }
 0xc97   :  { %v1510_v44 = vpop.f32.mrb[10].mxu1 }
 0xc98   :  { %v1586_v45 = vadd.f32 %v1585_v41, %v1510_v44  ;;  %v3748_v46 = vpop.f32.mrb[11].mxu1 }
 0xc99   :  { %v1769_v50 = vpop.f32.mrb[22].mxu0 }
 0xc9a   :  { %v1589_v51 = vadd.f32 %v4603_v8, %v1586_v45  ;;  %v1773_v52 = vadd.f32 %v1769_v50, %v199_v62  ;;  %v3781_v54 = vpop.f32.mrb[23].mxu0 }
 0xc9b   :  { %v204_v54 = vadd.f32 %v4578_v63, %v4488_v14 }
 0xc9c   :  { %v3354_v55 = vmul.f32 -1.442695, %v1589_v51  ;;  %v3360_v57 = vmul.f32 -1.442695, %v1773_v52 }
 0xc9e   :  { %4224 = vpow2.f32 %v3354_v55 }
 0xc9f   :  { %4226 = vpow2.f32 %v3360_v57 }
 0xca8   :  { %v4225_v61 = vpop.eup %4224 }
 0xca9   :  { %v4227_v58 = vpop.eup %4226  ;;  %v1593_v32 = vadd.f32 1.0, %v4225_v61 }
 0xcaa   :  { %v1777_v59 = vadd.f32 1.0, %v4227_v58 }
 0xcab   :  { %4228 = vrcp.f32 %v1593_v32 }
 0xcac   :  { %4230 = vrcp.f32 %v1777_v59 }
 0xcb5   :  { %v4229_v3 = vpop.eup %4228 }
 0xcb6   :  { %v4231_v6 = vpop.eup %4230  ;;  %v1596_v0 = vmul.f32 2.0, %v4229_v3  ;;  %v1598_v19 = vmul.f32 %v4229_v3, %v4730_v42 }
 0xcb7   :  { %v1780_v7 = vmul.f32 2.0, %v4231_v6  ;;  %v1782_v20 = vmul.f32 %v4231_v6, %v4734_v16  ;;  %v1623_v16 = vld [vmem:[%s5077_s9 + $0x60] sm:$0xff] }
 0xcb8   :  { %v3355_v9 = vadd.f32 -1.0, %v1596_v0  ;;  %v4043_v31 = vpack.c.bf16 %v1624_v30, %v1623_v16 }
 0xcb9   :  { %v3361_v12 = vadd.f32 -1.0, %v1780_v7 }
 0xcba   :  { %1600 = vrot.lane.b32.xlu0 %v3355_v9, %s4353_s20  ;;  %4044 = vmatpush3.bf16.msra.mxu1 %v4043_v31 }
 0xcbb   :  { %1784 = vrot.lane.b32.xlu1 %v3361_v12, %s4353_s20  ;;  %4045 = vmatprep.subr.bf16.mxu1 %v4350_v4 }
 0xcbe   :  { %4047 = vmatpush3.bf16.msra.mxu1 %v4046_v34 }
 0xcbf   :  { %4054 = vmatprep.subr.bf16.mxu1 %v4350_v4 }
 0xd2c   :  { %v1601_v15 = vpop.permute.xlu0 %1600 }
 0xd2d   :  { %v1785_v48 = vpop.permute.xlu1 %1784  ;;  %v1603_v17 = vmul.f32 %v4229_v3, %v1601_v15 }
 0xd2e   :  { %v1787_v18 = vmul.f32 %v4231_v6, %v1785_v48 }
 0xd2f   :  { %1605 = vrot.lane.b32.xlu0 %v1603_v17, %s4354_s23 }
 0xd30   :  { %1789 = vrot.lane.b32.xlu1 %v1787_v18, %s4354_s23 }
 0xda1   :  { %v1606_v21 = vpop.permute.xlu0 %1605 }
 0xda2   :  { %v1790_v22 = vpop.permute.xlu1 %1789  ;;  %v4788_v56 = vadd.f32 %v1606_v21, %v1598_v19 }
 0xda3   :  { %v4790_v60 = vadd.f32 %v1790_v22, %v1782_v20 }
 0xda4   :  { %v3356_v23 = vmul.f32 -2.0, %v4788_v56 }
 0xda5   :  { %v3362_v24 = vmul.f32 -2.0, %v4790_v60 }
 0xda6   :  { %v1611_v25 = vmul.f32 1.442695, %v3356_v23 }
 0xda7   :  { %v1795_v26 = vmul.f32 1.442695, %v3362_v24 }
 0xda8   :  { %4232 = vpow2.f32 %v1611_v25 }
 0xda9   :  { %4234 = vpow2.f32 %v1795_v26 }
 0xdb2   :  { %v4233_v27 = vpop.eup %4232 }
 0xdb3   :  { %v4235_v28 = vpop.eup %4234  ;;  %v1613_v29 = vadd.f32 1.0, %v4233_v27 }
 0xdb4   :  { %v1797_v42 = vadd.f32 1.0, %v4235_v28 }
 0xdb5   :  { %4236 = vrcp.f32 %v1613_v29 }
 0xdb6   :  { %4238 = vrcp.f32 %v1797_v42 }
 0xdbf   :  { %v4237_v35 = vpop.eup %4236 }
 0xdc0   :  { %v4239_v36 = vpop.eup %4238  ;;  %v1616_v37 = vmul.f32 2.0, %v4237_v35  ;;  %v1987_v35 = vld [vmem:[%s5077_s9 + $0x88] sm:$0xff] }
 0xdc1   :  { %v1800_v38 = vmul.f32 2.0, %v4239_v36  ;;  %v1988_v36 = vld [vmem:[%s5077_s9 + $0x90] sm:$0xff] }
 0xdc2   :  { %v3357_v39 = vadd.f32 -1.0, %v1616_v37 }
 0xdc3   :  { %v3363_v41 = vadd.f32 -1.0, %v1800_v38  ;;  %v1989_v38 = vld [vmem:[%s5077_s9 + $0x98] sm:$0xff] }
 0xdc4   :  { %1619 = vrot.lane.b32.xlu0 %v3357_v39, %s4353_s20  ;;  %v4070_v39 = vpack.c.bf16 %v1989_v38, %v1988_v36 }
 0xdc5   :  { %1803 = vrot.lane.b32.xlu1 %v3363_v41, %s4353_s20 }
 0xe36   :  { %v1620_v43 = vpop.permute.xlu0 %1619 }
 0xe37   :  { %v1804_v44 = vpop.permute.xlu1 %1803  ;;  %v1622_v62 = vmul.f32 %v4229_v3, %v1620_v43 }
 0xe38   :  { %v1806_v45 = vmul.f32 %v4231_v6, %v1804_v44 }
 0xe39   :  { %1628 = vrot.lane.b32.xlu0 %v1622_v62, %s4354_s23 }
 0xe3a   :  { %1878 = vrot.lane.b32.xlu1 %v1806_v45, %s4354_s23 }
 0xeab   :  { %v1629_v46 = vpop.permute.xlu0 %1628 }
 0xeac   :  { %v1879_v50 = vpop.permute.xlu1 %1878  ;;  %3769 = vmatmul.mubr.msk.f32.vlgmr.msra.gmra.mrb[4].mxu1 %vm230_vm3, %v1629_v46 }
 0xead   :  { %3802 = vmatmul.mubr.msk.f32.vlgmr.msra.gmra.mrb[24].mxu0 %vm230_vm3, %v1879_v50  ;;  %4056 = vmatpush3.bf16.msra.mxu1 %v4533_v47 }
 0xeae   :  { %4074 = vmatpush3.bf16.msra.mxu0 %v4452_v5  ;;  %4057 = vmatprep.subr.bf16.mxu1 %v4350_v4 }
 0xeaf   :  { %4075 = vmatprep.subr.bf16.mxu0 %v4350_v4  ;;  %3823 = vmatprep.mubr.msk.f32.mxu0 %vm4351_vm2, %v4352_v11 }
 0xeb0   :  { %3790 = vmatprep.mubr.msk.f32.mxu1 %vm4351_vm2, %v4352_v11 }
 0xeb1   :  { %4059 = vmatpush3.bf16.msra.mxu1 %v4551_v53 }
 0xeb2   :  { %4077 = vmatpush3.bf16.msra.mxu0 %v4469_v10  ;;  %4066 = vmatprep.subr.bf16.mxu1 %v4350_v4 }
 0xeb3   :  { %4084 = vmatprep.subr.bf16.mxu0 %v4350_v4 }
 0xeb4   :  { %3791 = vmatmul.mubr.msk.f32.vlgmr.msra.gmra.mrb[12].mxu1 %vm230_vm3, %v1629_v46 }
 0xeb5   :  { %3824 = vmatmul.mubr.msk.f32.vlgmr.msra.gmra.mrb[26].mxu0 %vm230_vm3, %v1879_v50  ;;  %3812 = vmatprep.mubr.msk.f32.mxu1 %vm4351_vm2, %v4352_v11 }
 0xeb6   :  { %4086 = vmatpush3.bf16.msra.mxu0 %v4509_v40  ;;  %3845 = vmatprep.mubr.msk.f32.mxu0 %vm4351_vm2, %v4352_v11 }
 0xeb7   :  { %4087 = vmatprep.subr.bf16.mxu0 %v4350_v4 }
 0xeba   :  { %4089 = vmatpush3.bf16.msra.mxu0 %v4539_v49 }
 0xebb   :  { %4096 = vmatprep.subr.bf16.mxu0 %v4350_v4 }
 0xf80   :  { %v1948_v51 = vpop.f32.mrb[24].mxu0 }
 0xf81   :  { %v3803_v52 = vpop.f32.mrb[25].mxu0 }
 0xf87   :  { %v1873_v55 = vpop.f32.mrb[12].mxu1 }
 0xf88   :  { %v2132_v57 = vpop.f32.mrb[26].mxu0  ;;  %v1949_v61 = vadd.f32 %v1948_v51, %v1873_v55  ;;  %v3792_v58 = vpop.f32.mrb[13].mxu1 }
 0xf89   :  { %v2136_v32 = vadd.f32 %v2132_v57, %v204_v54  ;;  %v3825_v59 = vpop.f32.mrb[27].mxu0 }
 0xf8a   :  { %v1952_v3 = vadd.f32 %v4603_v8, %v1949_v61 }
 0xf8b   :  { %v3372_v6 = vmul.f32 -1.442695, %v2136_v32  ;;  %v4896_v32 = vld [vmem:[%s5073_s5] ss:$0 sm:$0xff] }
 0xf8c   :  { %v3366_v0 = vmul.f32 -1.442695, %v1952_v3  ;;  %v209_v59 = vadd.f32 %v4896_v32, %v4584_v2 }
 0xf8d   :  { %4240 = vpow2.f32 %v3372_v6 }
 0xf8e   :  { %4242 = vpow2.f32 %v3366_v0 }
 0xf97   :  { %v4241_v7 = vpop.eup %4240 }
 0xf98   :  { %v4243_v9 = vpop.eup %4242  ;;  %v2140_v12 = vadd.f32 1.0, %v4241_v7 }
 0xf99   :  { %v1956_v15 = vadd.f32 1.0, %v4243_v9 }
 0xf9a   :  { %4244 = vrcp.f32 %v2140_v12 }
 0xf9b   :  { %4246 = vrcp.f32 %v1956_v15 }
 0xfa4   :  { %v4245_v48 = vpop.eup %4244 }
 0xfa5   :  { %v4247_v14 = vpop.eup %4246  ;;  %v2143_v63 = vmul.f32 2.0, %v4245_v48  ;;  %v2145_v24 = vmul.f32 %v4245_v48, %v4790_v60 }
 0xfa6   :  { %v1959_v17 = vmul.f32 2.0, %v4247_v14  ;;  %v1961_v26 = vmul.f32 %v4247_v14, %v4788_v56  ;;  %v1986_v56 = vld [vmem:[%s5077_s9 + $0x80] sm:$0xff] }
 0xfa7   :  { %v3373_v18 = vadd.f32 -1.0, %v2143_v63  ;;  %v4067_v37 = vpack.c.bf16 %v1987_v35, %v1986_v56 }
 0xfa8   :  { %v3367_v19 = vadd.f32 -1.0, %v1959_v17 }
 0xfa9   :  { %2147 = vrot.lane.b32.xlu1 %v3373_v18, %s4353_s20  ;;  %4068 = vmatpush3.bf16.msra.mxu1 %v4067_v37 }
 0xfaa   :  { %1963 = vrot.lane.b32.xlu0 %v3367_v19, %s4353_s20  ;;  %4069 = vmatprep.subr.bf16.mxu1 %v4350_v4 }
 0xfad   :  { %4071 = vmatpush3.bf16.msra.mxu1 %v4070_v39  ;;  %v2350_v39 = vld [vmem:[%s5077_s9 + $0xa8] sm:$0xff] }
 0xfae   :  { %4078 = vmatprep.subr.bf16.mxu1 %v4350_v4 }
0x101b   :  { %v2148_v20 = vpop.permute.xlu1 %2147 }
0x101c   :  { %v2150_v21 = vmul.f32 %v4245_v48, %v2148_v20  ;;  %v1964_v22 = vpop.permute.xlu0 %1963 }
0x101d   :  { %v1966_v23 = vmul.f32 %v4247_v14, %v1964_v22 }
0x101e   :  { %2152 = vrot.lane.b32.xlu1 %v2150_v21, %s4354_s23 }
0x101f   :  { %1968 = vrot.lane.b32.xlu0 %v1966_v23, %s4354_s23 }
0x1090   :  { %v2153_v25 = vpop.permute.xlu1 %2152 }
0x1091   :  { %v4845_v27 = vadd.f32 %v2153_v25, %v2145_v24  ;;  %v1969_v28 = vpop.permute.xlu0 %1968 }
0x1092   :  { %v4847_v29 = vadd.f32 %v1969_v28, %v1961_v26 }
0x1093   :  { %v3374_v42 = vmul.f32 -2.0, %v4845_v27 }
0x1094   :  { %v3368_v16 = vmul.f32 -2.0, %v4847_v29 }
0x1095   :  { %v2158_v30 = vmul.f32 1.442695, %v3374_v42 }
0x1096   :  { %v1974_v13 = vmul.f32 1.442695, %v3368_v16 }
0x1097   :  { %4248 = vpow2.f32 %v2158_v30 }
0x1098   :  { %4250 = vpow2.f32 %v1974_v13 }
0x10a1   :  { %v4249_v31 = vpop.eup %4248 }
0x10a2   :  { %v4251_v33 = vpop.eup %4250  ;;  %v2160_v34 = vadd.f32 1.0, %v4249_v31 }
0x10a3   :  { %v1976_v60 = vadd.f32 1.0, %v4251_v33 }
0x10a4   :  { %4252 = vrcp.f32 %v2160_v34 }
0x10a5   :  { %4254 = vrcp.f32 %v1976_v60 }
0x10ae   :  { %v4253_v41 = vpop.eup %4252 }
0x10af   :  { %v4255_v43 = vpop.eup %4254  ;;  %v2163_v44 = vmul.f32 2.0, %v4253_v41 }
0x10b0   :  { %v1979_v62 = vmul.f32 2.0, %v4255_v43 }
0x10b1   :  { %v3375_v45 = vadd.f32 -1.0, %v2163_v44 }
0x10b2   :  { %v3369_v46 = vadd.f32 -1.0, %v1979_v62 }
0x10b3   :  { %2166 = vrot.lane.b32.xlu1 %v3375_v45, %s4353_s20 }
0x10b4   :  { %1982 = vrot.lane.b32.xlu0 %v3369_v46, %s4353_s20 }
0x1125   :  { %v2167_v50 = vpop.permute.xlu1 %2166 }
0x1126   :  { %v2169_v51 = vmul.f32 %v4245_v48, %v2167_v50  ;;  %v1983_v52 = vpop.permute.xlu0 %1982 }
0x1127   :  { %v1985_v54 = vmul.f32 %v4247_v14, %v1983_v52  ;;  %v2352_v52 = vld [vmem:[%s5077_s9 + $0xb8] sm:$0xff] }
0x1128   :  { %2241 = vrot.lane.b32.xlu1 %v2169_v51, %s4354_s23  ;;  %v2351_v51 = vld [vmem:[%s5077_s9 + $0xb0] sm:$0xff] }
0x1129   :  { %1991 = vrot.lane.b32.xlu0 %v1985_v54, %s4354_s23  ;;  %v4094_v54 = vpack.c.bf16 %v2352_v52, %v2351_v51  ;;  %v2715_v51 = vld [vmem:[%s5077_s9 + $0xd8] sm:$0xff] }
0x119a   :  { %v2242_v55 = vpop.permute.xlu1 %2241 }
0x119b   :  { %3846 = vmatmul.mubr.msk.f32.vlgmr.msra.gmra.mrb[28].mxu0 %vm230_vm3, %v2242_v55  ;;  %v1992_v57 = vpop.permute.xlu0 %1991 }
0x119c   :  { %4098 = vmatpush3.bf16.msra.mxu0 %v4452_v5  ;;  %3813 = vmatmul.mubr.msk.f32.vlgmr.msra.gmra.mrb[4].mxu1 %vm230_vm3, %v1992_v57 }
0x119d   :  { %4080 = vmatpush3.bf16.msra.mxu1 %v4533_v47  ;;  %4099 = vmatprep.subr.bf16.mxu0 %v4350_v4 }
0x119e   :  { %4081 = vmatprep.subr.bf16.mxu1 %v4350_v4  ;;  %3867 = vmatprep.mubr.msk.f32.mxu0 %vm4351_vm2, %v4352_v11 }
0x119f   :  { %3834 = vmatprep.mubr.msk.f32.mxu1 %vm4351_vm2, %v4352_v11 }
0x11a0   :  { %4101 = vmatpush3.bf16.msra.mxu0 %v4469_v10 }
0x11a1   :  { %4083 = vmatpush3.bf16.msra.mxu1 %v4551_v53  ;;  %4108 = vmatprep.subr.bf16.mxu0 %v4350_v4 }
0x11a2   :  { %4090 = vmatprep.subr.bf16.mxu1 %v4350_v4 }
0x11a3   :  { %3868 = vmatmul.mubr.msk.f32.vlgmr.msra.gmra.mrb[30].mxu0 %vm230_vm3, %v2242_v55 }
0x11a4   :  { %3835 = vmatmul.mubr.msk.f32.vlgmr.msra.gmra.mrb[14].mxu1 %vm230_vm3, %v1992_v57  ;;  %4110 = vmatpush3.bf16.msra.mxu0 %v4509_v40 }
0x11a5   :  { %4111 = vmatprep.subr.bf16.mxu0 %v4350_v4  ;;  %3889 = vmatprep.mubr.msk.f32.mxu0 %vm4351_vm2, %v4352_v11 }
0x11a6   :  { %3856 = vmatprep.mubr.msk.f32.mxu1 %vm4351_vm2, %v4352_v11 }
0x11a8   :  { %4113 = vmatpush3.bf16.msra.mxu0 %v4539_v49 }
0x11a9   :  { %4120 = vmatprep.subr.bf16.mxu0 %v4350_v4 }
0x126e   :  { %v2311_v61 = vpop.f32.mrb[28].mxu0 }
0x126f   :  { %v3847_v58 = vpop.f32.mrb[29].mxu0 }
0x1276   :  { %v2495_v3 = vpop.f32.mrb[30].mxu0 }
0x1277   :  { %v2499_v6 = vadd.f32 %v2495_v3, %v209_v59  ;;  %v3869_v0 = vpop.f32.mrb[31].mxu0  ;;  %v2236_v7 = vpop.f32.mrb[14].mxu1 }
0x1278   :  { %v2312_v9 = vadd.f32 %v2311_v61, %v2236_v7  ;;  %v3836_v12 = vpop.f32.mrb[15].mxu1 }
0x1279   :  { %v3384_v15 = vmul.f32 -1.442695, %v2499_v6 }
0x127a   :  { %v2315_v48 = vadd.f32 %v4603_v8, %v2312_v9 }
0x127b   :  { %4256 = vpow2.f32 %v3384_v15 }
0x127c   :  { %v3378_v14 = vmul.f32 -1.442695, %v2315_v48 }
0x127e   :  { %4258 = vpow2.f32 %v3378_v14  ;;  %v4960_v14 = vld [vmem:[%s5076_s8] ss:$0 sm:$0xff]  ;;  %s4302_s8 = scalar_lea.vmem %s3269_s26, 64 }
0x127f   :  { %p4303_p0 = scmp.ne.s32.totalorder %s3269_s26, %s4302_s8  ;;  %p4308_p2 = scmp.lt.s32.totalorder %s4302_s8, %s4302_s8 }
0x1281   :  { %p4309_p3 = por %p4308_p2, %p4307_p1 }
0x1283   :  { %p4310_p4 = pnand %p4309_p3, %p4303_p0 }
0x1285   :  { %v4257_v63 = vpop.eup %4256 }
0x1286   :  { %v2503_v17 = vadd.f32 1.0, %v4257_v63 }
0x1288   :  { %v4259_v18 = vpop.eup %4258  ;;  %4260 = vrcp.f32 %v2503_v17 }
0x1289   :  { %v2319_v19 = vadd.f32 1.0, %v4259_v18 }
0x128b   :  { %4262 = vrcp.f32 %v2319_v19 }
0x1292   :  { %v4261_v20 = vpop.eup %4260 }
0x1293   :  { %v2506_v2 = vmul.f32 2.0, %v4261_v20  ;;  %v2508_v42 = vmul.f32 %v4261_v20, %v4845_v27 }
0x1295   :  { %v4263_v21 = vpop.eup %4262  ;;  %v3385_v22 = vadd.f32 -1.0, %v2506_v2 }
0x1296   :  { %v2322_v23 = vmul.f32 2.0, %v4263_v21  ;;  %v2324_v13 = vmul.f32 %v4263_v21, %v4847_v29  ;;  %v2349_v29 = vld [vmem:[%s5077_s9 + $0xa0] sm:$0xff] }
0x1297   :  { %2510 = vrot.lane.b32.xlu1 %v3385_v22, %s4353_s20  ;;  %v4091_v41 = vpack.c.bf16 %v2350_v39, %v2349_v29  ;;  %v2712_v29 = vld [vmem:[%s5077_s9 + $0xc0] sm:$0xff] }
0x1298   :  { %v3379_v24 = vadd.f32 -1.0, %v2322_v23 }
0x1299   :  { %4092 = vmatpush3.bf16.msra.mxu1 %v4091_v41 }
0x129a   :  { %2326 = vrot.lane.b32.xlu0 %v3379_v24, %s4353_s20  ;;  %4093 = vmatprep.subr.bf16.mxu1 %v4350_v4 }
0x129d   :  { %4095 = vmatpush3.bf16.msra.mxu1 %v4094_v54 }
0x129e   :  { %4102 = vmatprep.subr.bf16.mxu1 %v4350_v4 }
0x1309   :  { %v2511_v8 = vpop.permute.xlu1 %2510 }
0x130a   :  { %v2513_v25 = vmul.f32 %v4261_v20, %v2511_v8 }
0x130c   :  { %2515 = vrot.lane.b32.xlu1 %v2513_v25, %s4354_s23  ;;  %v2327_v26 = vpop.permute.xlu0 %2326 }
0x130d   :  { %v2329_v28 = vmul.f32 %v4263_v21, %v2327_v26 }
0x130f   :  { %2331 = vrot.lane.b32.xlu0 %v2329_v28, %s4354_s23 }
0x137e   :  { %v2516_v16 = vpop.permute.xlu1 %2515 }
0x137f   :  { %v4906_v30 = vadd.f32 %v2516_v16, %v2508_v42 }
0x1381   :  { %v3386_v31 = vmul.f32 -2.0, %v4906_v30  ;;  %v2332_v33 = vpop.permute.xlu0 %2331 }
0x1382   :  { %v4910_v34 = vadd.f32 %v2332_v33, %v2324_v13 }
0x1383   :  { %v2521_v60 = vmul.f32 1.442695, %v3386_v31 }
0x1384   :  { %v3380_v56 = vmul.f32 -2.0, %v4910_v34 }
0x1385   :  { %4264 = vpow2.f32 %v2521_v60 }
0x1386   :  { %v2337_v35 = vmul.f32 1.442695, %v3380_v56 }
0x1388   :  { %4266 = vpow2.f32 %v2337_v35 }
0x138f   :  { %v4265_v36 = vpop.eup %4264 }
0x1390   :  { %v2523_v37 = vadd.f32 1.0, %v4265_v36 }
0x1392   :  { %v4267_v38 = vpop.eup %4266  ;;  %4268 = vrcp.f32 %v2523_v37 }
0x1393   :  { %v2339_v27 = vadd.f32 1.0, %v4267_v38 }
0x1395   :  { %4270 = vrcp.f32 %v2339_v27 }
0x139c   :  { %v4269_v43 = vpop.eup %4268 }
0x139d   :  { %v2526_v44 = vmul.f32 2.0, %v4269_v43 }
0x139f   :  { %v4271_v62 = vpop.eup %4270  ;;  %v3387_v45 = vadd.f32 -1.0, %v2526_v44 }
0x13a0   :  { %v2342_v46 = vmul.f32 2.0, %v4271_v62 }
0x13a1   :  { %2529 = vrot.lane.b32.xlu1 %v3387_v45, %s4353_s20 }
0x13a2   :  { %v3381_v50 = vadd.f32 -1.0, %v2342_v46 }
0x13a4   :  { %2345 = vrot.lane.b32.xlu0 %v3381_v50, %s4353_s20  ;;  %v2714_v50 = vld [vmem:[%s5077_s9 + $0xd0] sm:$0xff] }
0x13a5   :  { %v4118_v52 = vpack.c.bf16 %v2715_v51, %v2714_v50 }
0x1413   :  { %v2530_v55 = vpop.permute.xlu1 %2529 }
0x1414   :  { %v2532_v57 = vmul.f32 %v4261_v20, %v2530_v55 }
0x1416   :  { %2604 = vrot.lane.b32.xlu1 %v2532_v57, %s4354_s23  ;;  %v2346_v61 = vpop.permute.xlu0 %2345 }
0x1417   :  { %v2348_v58 = vmul.f32 %v4263_v21, %v2346_v61 }
0x1419   :  { %2354 = vrot.lane.b32.xlu0 %v2348_v58, %s4354_s23 }
0x1488   :  { %v2605_v59 = vpop.permute.xlu1 %2604 }
0x1489   :  { %3890 = vmatmul.mubr.msk.f32.vlgmr.msra.gmra.mrb[32].mxu0 %vm230_vm3, %v2605_v59 }
0x148a   :  { %4122 = vmatpush3.bf16.msra.mxu0 %v4452_v5  ;;  %3911 = vmatprep.mubr.msk.f32.mxu0 %vm4351_vm2, %v4352_v11 }
0x148b   :  { %4123 = vmatprep.subr.bf16.mxu0 %v4350_v4  ;;  %v2355_v3 = vpop.permute.xlu0 %2354 }
0x148c   :  { %3857 = vmatmul.mubr.msk.f32.vlgmr.msra.gmra.mrb[4].mxu1 %vm230_vm3, %v2355_v3 }
0x148d   :  { %4104 = vmatpush3.bf16.msra.mxu1 %v4533_v47  ;;  %3878 = vmatprep.mubr.msk.f32.mxu1 %vm4351_vm2, %v4352_v11 }
0x148e   :  { %4125 = vmatpush3.bf16.msra.mxu0 %v4469_v10  ;;  %4105 = vmatprep.subr.bf16.mxu1 %v4350_v4 }
0x148f   :  { %4132 = vmatprep.subr.bf16.mxu0 %v4350_v4 }
0x1491   :  { %3912 = vmatmul.mubr.msk.f32.vlgmr.msra.gmra.mrb[34].mxu0 %vm230_vm3, %v2605_v59  ;;  %4107 = vmatpush3.bf16.msra.mxu1 %v4551_v53 }
0x1492   :  { %4134 = vmatpush3.bf16.msra.mxu0 %v4509_v40  ;;  %4114 = vmatprep.subr.bf16.mxu1 %v4350_v4  ;;  %v214_v40 = vadd.f32 %v4896_v32, %v4582_v1 }
0x1493   :  { %4135 = vmatprep.subr.bf16.mxu0 %v4350_v4  ;;  %3933 = vmatprep.mubr.msk.f32.mxu0 %vm4351_vm2, %v4352_v11 }
0x1494   :  { %3879 = vmatmul.mubr.msk.f32.vlgmr.msra.gmra.mrb[16].mxu1 %vm230_vm3, %v2355_v3 }
0x1495   :  { %3900 = vmatprep.mubr.msk.f32.mxu1 %vm4351_vm2, %v4352_v11 }
0x1496   :  { %4137 = vmatpush3.bf16.msra.mxu0 %v4539_v49 }
0x1497   :  { %3947 = vmatprep.subr.mxu0 %v4352_v11 }
0x155c   :  { %v2674_v5 = vpop.f32.mrb[32].mxu0 }
0x155d   :  { %v3891_v10 = vpop.f32.mrb[33].mxu0 }
0x1564   :  { %v2858_v6 = vpop.f32.mrb[34].mxu0 }
0x1565   :  { %v2862_v0 = vadd.f32 %v2858_v6, %v214_v40  ;;  %v3913_v7 = vpop.f32.mrb[35].mxu0 }
0x1567   :  { %v3396_v9 = vmul.f32 -1.442695, %v2862_v0  ;;  %v2599_v12 = vpop.f32.mrb[16].mxu1 }
0x1568   :  { %v2675_v15 = vadd.f32 %v2674_v5, %v2599_v12  ;;  %v3880_v48 = vpop.f32.mrb[17].mxu1 }
0x1569   :  { %4272 = vpow2.f32 %v3396_v9 }
0x156a   :  { %v2678_v49 = vadd.f32 %v4960_v14, %v2675_v15 }
0x156c   :  { %v3390_v63 = vmul.f32 -1.442695, %v2678_v49 }
0x156e   :  { %4274 = vpow2.f32 %v3390_v63 }
0x1573   :  { %v4273_v17 = vpop.eup %4272 }
0x1574   :  { %v2866_v18 = vadd.f32 1.0, %v4273_v17 }
0x1576   :  { %4276 = vrcp.f32 %v2866_v18 }
0x1578   :  { %v4275_v1 = vpop.eup %4274 }
0x1579   :  { %v2682_v32 = vadd.f32 1.0, %v4275_v1 }
0x157b   :  { %4278 = vrcp.f32 %v2682_v32 }
0x1580   :  { %v4277_v19 = vpop.eup %4276 }
0x1581   :  { %v2869_v20 = vmul.f32 2.0, %v4277_v19  ;;  %v2871_v28 = vmul.f32 %v4277_v19, %v4906_v30 }
0x1583   :  { %v3397_v2 = vadd.f32 -1.0, %v2869_v20  ;;  %v3076_v20 = vld [vmem:[%s5077_s9 + $0xe8] sm:$0xff] }
0x1585   :  { %v4279_v21 = vpop.eup %4278  ;;  %2873 = vrot.lane.b32.xlu1 %v3397_v2, %s4353_s20  ;;  %v3077_v2 = vld [vmem:[%s5077_s9 + $0xf0] sm:$0xff] }
0x1586   :  { %v2685_v22 = vmul.f32 2.0, %v4279_v21  ;;  %v2687_v31 = vmul.f32 %v4279_v21, %v4910_v34  ;;  %v2713_v34 = vld [vmem:[%s5077_s9 + $0xc8] sm:$0xff] }
0x1587   :  { %v4115_v41 = vpack.c.bf16 %v2713_v34, %v2712_v29 }
0x1588   :  { %v3391_v23 = vadd.f32 -1.0, %v2685_v22  ;;  %v3078_v22 = vld [vmem:[%s5077_s9 + $0xf8] sm:$0xff] }
0x1589   :  { %4116 = vmatpush3.bf16.msra.mxu1 %v4115_v41 }
0x158a   :  { %2689 = vrot.lane.b32.xlu0 %v3391_v23, %s4353_s20  ;;  %4117 = vmatprep.subr.bf16.mxu1 %v4350_v4 }
0x158d   :  { %4119 = vmatpush3.bf16.msra.mxu1 %v4118_v52 }
0x158e   :  { %4126 = vmatprep.subr.bf16.mxu1 %v4350_v4 }
0x15f7   :  { %v2874_v24 = vpop.permute.xlu1 %2873 }
0x15f8   :  { %v2876_v8 = vmul.f32 %v4277_v19, %v2874_v24 }
0x15fa   :  { %2878 = vrot.lane.b32.xlu1 %v2876_v8, %s4354_s23  ;;  %v4142_v8 = vpack.c.bf16 %v3078_v22, %v3077_v2 }
0x15fc   :  { %v2690_v25 = vpop.permute.xlu0 %2689 }
0x15fd   :  { %v2692_v26 = vmul.f32 %v4279_v21, %v2690_v25 }
0x15ff   :  { %2694 = vrot.lane.b32.xlu0 %v2692_v26, %s4354_s23 }
0x166c   :  { %v2879_v42 = vpop.permute.xlu1 %2878 }
0x166d   :  { %v4968_v16 = vadd.f32 %v2879_v42, %v2871_v28 }
0x166f   :  { %v3398_v13 = vmul.f32 -2.0, %v4968_v16 }
0x1671   :  { %v2884_v33 = vmul.f32 1.442695, %v3398_v13  ;;  %v2695_v60 = vpop.permute.xlu0 %2694 }
0x1672   :  { %v4972_v56 = vadd.f32 %v2695_v60, %v2687_v31  ;;  %v3309_v31 = vld [vmem:[%s5078_s10] ss:$0 sm:$0xff] }
0x1673   :  { %4280 = vpow2.f32 %v2884_v33 }
0x1674   :  { %v3392_v35 = vmul.f32 -2.0, %v4972_v56 }
0x1676   :  { %v2700_v36 = vmul.f32 1.442695, %v3392_v35 }
0x1678   :  { %4282 = vpow2.f32 %v2700_v36 }
0x167d   :  { %v4281_v37 = vpop.eup %4280 }
0x167e   :  { %v2886_v38 = vadd.f32 1.0, %v4281_v37 }
0x1680   :  { %4284 = vrcp.f32 %v2886_v38 }
0x1682   :  { %v4283_v30 = vpop.eup %4282 }
0x1683   :  { %v2702_v27 = vadd.f32 1.0, %v4283_v30 }
0x1685   :  { %4286 = vrcp.f32 %v2702_v27 }
0x168a   :  { %v4285_v39 = vpop.eup %4284 }
0x168b   :  { %v2889_v43 = vmul.f32 2.0, %v4285_v39 }
0x168d   :  { %v3399_v44 = vadd.f32 -1.0, %v2889_v43 }
0x168f   :  { %v4287_v62 = vpop.eup %4286  ;;  %2892 = vrot.lane.b32.xlu1 %v3399_v44, %s4353_s20 }
0x1690   :  { %v2705_v45 = vmul.f32 2.0, %v4287_v62 }
0x1692   :  { %v3393_v46 = vadd.f32 -1.0, %v2705_v45 }
0x1694   :  { %2708 = vrot.lane.b32.xlu0 %v3393_v46, %s4353_s20 }
0x1701   :  { %v2893_v54 = vpop.permute.xlu1 %2892 }
0x1702   :  { %v2895_v55 = vmul.f32 %v4277_v19, %v2893_v54  ;;  %v3075_v19 = vld [vmem:[%s5077_s9 + $0xe0] sm:$0xff] }
0x1704   :  { %2967 = vrot.lane.b32.xlu1 %v2895_v55, %s4354_s23 }
0x1706   :  { %v2709_v57 = vpop.permute.xlu0 %2708 }
0x1707   :  { %v2711_v61 = vmul.f32 %v4279_v21, %v2709_v57  ;;  %v4139_v21 = vpack.c.bf16 %v3076_v20, %v3075_v19 }
0x1709   :  { %2717 = vrot.lane.b32.xlu0 %v2711_v61, %s4354_s23 }
0x1776   :  { %v2968_v58 = vpop.permute.xlu1 %2967 }
0x1777   :  { %3157 = vst.msk [vmem:[#allocation3] sm:$0x3] %vm3156_vm4, %v2968_v58  ;;  %3934 = vmatmul.mubr.msk.f32.vlgmr.msra.gmra.mrb[36].mxu0 %vm230_vm3, %v2968_v58 }
0x1778   :  { %3949 = vmatprep.mubr.msk.f32.mxu0 %vm4351_vm2, %v4352_v11 }
0x177b   :  { %v2718_v59 = vpop.permute.xlu0 %2717 }
0x177c   :  { %3901 = vmatmul.mubr.msk.f32.vlgmr.msra.gmra.mrb[4].mxu1 %vm230_vm3, %v2718_v59 }
0x177d   :  { %4128 = vmatpush3.bf16.msra.mxu1 %v4533_v47  ;;  %3922 = vmatprep.mubr.msk.f32.mxu1 %vm4351_vm2, %v4352_v11 }
0x177e   :  { %4129 = vmatprep.subr.bf16.mxu1 %v4350_v4 }
0x1781   :  { %4131 = vmatpush3.bf16.msra.mxu1 %v4551_v53 }
0x1782   :  { %4138 = vmatprep.subr.bf16.mxu1 %v4350_v4 }
0x1784   :  { %3923 = vmatmul.mubr.msk.f32.vlgmr.msra.gmra.mrb[18].mxu1 %vm230_vm3, %v2718_v59 }
0x1785   :  { %3944 = vmatprep.mubr.msk.f32.mxu1 %vm4351_vm2, %v4352_v11  ;;  %4140 = vmatpush3.bf16.msra.mxu1 %v4139_v21 }
0x1786   :  { %4141 = vmatprep.subr.bf16.mxu1 %v4350_v4 }
0x1789   :  { %4143 = vmatpush3.bf16.msra.mxu1 %v4142_v8 }
0x184a   :  { %v3037_v3 = vpop.f32.mrb[36].mxu0 }
0x184b   :  { %v3935_v5 = vpop.f32.mrb[37].mxu0 }
0x1857   :  { %v2962_v10 = vpop.f32.mrb[18].mxu1 }
0x1858   :  { %v3038_v40 = vadd.f32 %v3037_v3, %v2962_v10  ;;  %v3924_v6 = vpop.f32.mrb[19].mxu1 }
0x185a   :  { %v3041_v47 = vadd.f32 %v4960_v14, %v3038_v40 }
0x185c   :  { %v3402_v0 = vmul.f32 -1.442695, %v3041_v47 }
0x185e   :  { %4288 = vpow2.f32 %v3402_v0 }
0x1868   :  { %v4289_v7 = vpop.eup %4288 }
0x1869   :  { %v3045_v9 = vadd.f32 1.0, %v4289_v7 }
0x186b   :  { %4290 = vrcp.f32 %v3045_v9 }
0x1875   :  { %v4291_v53 = vpop.eup %4290 }
0x1876   :  { %v3048_v12 = vmul.f32 2.0, %v4291_v53  ;;  %v3050_v11 = vmul.f32 %v4291_v53, %v4972_v56 }
0x1878   :  { %v3403_v15 = vadd.f32 -1.0, %v3048_v12 }
0x187a   :  { %3052 = vrot.lane.b32.xlu0 %v3403_v15, %s4353_s20 }
0x18ec   :  { %v3053_v48 = vpop.permute.xlu0 %3052 }
0x18ed   :  { %v3055_v49 = vmul.f32 %v4291_v53, %v3053_v48 }
0x18ef   :  { %3057 = vrot.lane.b32.xlu1 %v3055_v49, %s4354_s23 }
0x1961   :  { %v3058_v63 = vpop.permute.xlu1 %3057 }
0x1962   :  { %v3060_v17 = vadd.f32 %v3058_v63, %v3050_v11 }
0x1964   :  { %v3404_v18 = vmul.f32 -2.0, %v3060_v17 }
0x1966   :  { %v3063_v14 = vmul.f32 1.442695, %v3404_v18 }
0x1968   :  { %4292 = vpow2.f32 %v3063_v14 }
0x1972   :  { %v4293_v1 = vpop.eup %4292 }
0x1973   :  { %v3065_v32 = vadd.f32 1.0, %v4293_v1 }
0x1975   :  { %4294 = vrcp.f32 %v3065_v32 }
0x197f   :  { %v4295_v23 = vpop.eup %4294 }
0x1980   :  { %v3068_v24 = vmul.f32 2.0, %v4295_v23 }
0x1982   :  { %v3405_v25 = vadd.f32 -1.0, %v3068_v24 }
0x1984   :  { %3071 = vrot.lane.b32.xlu0 %v3405_v25, %s4353_s20 }
0x1988   :  { %3162 = vrot.lane.b32.xlu0 %v4968_v16, %s4355_s22  ;;  %v67_v16 = vld [vmem:[%s5079_s11] sm:$0xff] }
0x1989   :  { %3948 = vmatpush3.msra.mxu0 %v67_v16 }
0x19f6   :  { %v3072_v26 = vpop.permute.xlu0 %3071 }
0x19f7   :  { %v3074_v28 = vmul.f32 %v4291_v53, %v3072_v26 }
0x19f9   :  { %3080 = vrot.lane.b32.xlu1 %v3074_v28, %s4354_s23 }
0x19fa   :  { %v3163_v42 = vpop.permute.xlu0 %3162 }
0x19fb   :  { %3165 = vst.msk [vmem:[#allocation5] sm:$0x3] %vm3156_vm4, %v3163_v42 }
0x19fd   :  { %3167 = vrot.lane.b32.xlu1 %v3060_v17, %s4355_s22 }
0x1a6b   :  { %v3081_v13 = vpop.permute.xlu1 %3080 }
0x1a6c   :  { %3160 = vst.msk [vmem:[#allocation3 + $0x2] sm:$0x3] %vm3156_vm4, %v3081_v13  ;;  %3945 = vmatmul.mubr.msk.f32.vlgmr.msra.gmra.mrb[4].mxu1 %vm230_vm3, %v3081_v13 }
0x1a6f   :  { %v3168_v4 = vpop.permute.xlu1 %3167 }
0x1a70   :  { %3171 = vst.msk [vmem:[#allocation5 + $0x2] sm:$0x3] %vm3156_vm4, %v3168_v4 }
0x1b3f   :  { %v3150_v33 = vpop.f32.mrb[4].mxu1 }
0x1b40   :  { %v4144_v60 = vadd.f32 %v3309_v31, %v3150_v33  ;;  %v3946_v56 = vpop.f32.mrb[5].mxu1 }
0x1b42   :  { %v3172_v35 = vmax.f32 %v4144_v60, 0.0 }
0x1b44   :  { %3950 = vmatmul.mubr.msk.f32.vlgmr.msra.gmra.mrb[38].mxu0 %vm3179_vm5, %v3172_v35 }
0x1b45   :  { %4313 = shalt.err (!%p4310_p4)
}
0x1b46   :  { %s4314_s29 = scalar_lea.hbm %s5082_s14, 64 }
0x1b47   :  { %p4315_p5 = scmp.ne.s32.totalorder %s5082_s14, %s4314_s29  ;;  %p4318_p6 = scmp.lt.u32.totalorder %s4314_s29, %s5082_s14 }
0x1b49   :  { %p4320_p7 = pnand %p4318_p6, %p4315_p5 }
0x1b4b   :  { %4323 = shalt.err (!%p4320_p7)
}
0x1b4c   :  { %s4358_s17 = smov 2   ;;  %s4324_s0 = scalar_lea.vmem %s3281_s28, 64 }
0x1b4d   :  { %3274 = dma.vmem_to_hbm [thread:$0]  %s3269_s26, 64, %s5082_s14, [#allocation4], %s4354_s23, %s4354_s23, %s4358_s17  }
0x1b4e   :  { %p4325_p8 = scmp.ne.s32.totalorder %s3281_s28, %s4324_s0  ;;  %p4329_p9 = scmp.lt.s32.totalorder %s3281_s28, %s3281_s28 }
0x1b4f   :  { %p4330_p10 = scmp.lt.s32.totalorder %s4324_s0, %s4324_s0 }
0x1b51   :  { %p4331_p11 = por %p4330_p10, %p4329_p9 }
0x1b53   :  { %p4332_p12 = pnand %p4331_p11, %p4325_p8 }
0x1b55   :  { %4335 = shalt.err (!%p4332_p12)
}
0x1b56   :  { %s4336_s19 = scalar_lea.hbm %s5083_s15, 64 }
0x1b57   :  { %p4337_p13 = scmp.ne.s32.totalorder %s5083_s15, %s4336_s19  ;;  %p4340_p0 = scmp.lt.u32.totalorder %s4336_s19, %s5083_s15 }
0x1b59   :  { %p4342_p1 = pnand %p4340_p0, %p4337_p13 }
0x1b5b   :  { %4345 = shalt.err (!%p4342_p1)
}
0x1b5c   :  { %3286 = dma.vmem_to_hbm [thread:$0]  %s3281_s28, 64, %s5083_s15, [#allocation6], %s4354_s23, %s4354_s23, %s4358_s17   ;;  %v3407_v36 = vld [vmem:[#allocation2] ss:$0 sm:$0xff]  ;;  %vm3259_vm6 = vcmask 1024  }
0x1c17   :  { %v3249_v37 = vpop.f32.mrb[38].mxu0 }
0x1c18   :  { %v3250_v38 = vadd.f32 %v3407_v36, %v3249_v37  ;;  %v3951_v30 = vpop.f32.mrb[39].mxu0 }
0x1c1a   :  { %v3409_v27 = vmul.f32 -1.442695, %v3250_v38 }
0x1c1c   :  { %4296 = vpow2.f32 %v3409_v27 }
0x1c26   :  { %v4297_v29 = vpop.eup %4296 }
0x1c27   :  { %v3256_v34 = vadd.f32 1.0, %v4297_v29 }
0x1c29   :  { %4298 = vrcp.f32 %v3256_v34 }
0x1c33   :  { %v4299_v39 = vpop.eup %4298 }
0x1c34   :  { %3260 = vst.msk [vmem:[%s5081_s13] sm:$0x3] %vm3259_vm6, %v4299_v39 }
0x1c35   :  { %4346 = dma.done.wait [#allocation4], 64  }
0x1c36   :  { %4347 = vsyncadd [#allocation4], 4294967232 }
0x1c37   :  { %4348 = dma.done.wait [#allocation6], 64  }
0x1c38   :  { %4349 = vsyncadd [#allocation6], 4294967232 }
0x1c39   :  { %3295 = vsyncpa [#allocation4], 1 }
0x1c3a   :  { %3296 = vsyncpa [#allocation6], 1 }

</bundles_post_ra>
